<compile_context>
chip_gen: v7x
topology: tpu7x:2x2x1
jax: 0.10.0
libtpu: 0.0.40
codegen_flags: <defaults>
</compile_context>

<pallas_src>
import functools

import jax
import jax.numpy as jnp
import numpy as np
from jax.experimental import pallas as pl
from jax.experimental.pallas import tpu as pltpu


# ---------------------------------------------------------------------------
# Fused kernel: conv1+ReLU+pool -> conv2+ReLU+pool -> fc1+ReLU -> fc2+ReLU -> fc3
# TB samples per grid step; all weights resident in VMEM across the grid.
# ---------------------------------------------------------------------------
def convnet_kernel(xsh_ref, c1m_ref, c1b_ref, c2m_ref, c2b_ref,
                   r2sel_ref, fsel_ref, wf1_ref, bf1_ref,
                   wf2_ref, bf2_ref, wf3_ref, bf3_ref, o_ref):
    f32 = jnp.float32
    tb = xsh_ref.shape[1] // 24            # samples per block (static)

    def rowsel(n_out, n_in, parity):
        # S[q, r] = 1  iff  r == 2*q + parity   (even/odd packed-row picker)
        q = jax.lax.broadcasted_iota(jnp.int32, (n_out, n_in), 0)
        r = jax.lax.broadcasted_iota(jnp.int32, (n_out, n_in), 1)
        return jnp.where(r == 2 * q + parity, 1.0, 0.0).astype(f32)

    def colsel(n_in, n_out, parity):
        # S[r, q] = 1  iff  r == 2*q + parity   (even/odd lane picker)
        r = jax.lax.broadcasted_iota(jnp.int32, (n_in, n_out), 0)
        q = jax.lax.broadcasted_iota(jnp.int32, (n_in, n_out), 1)
        return jnp.where(r == 2 * q + parity, 1.0, 0.0).astype(f32)

    def maxpool2x2(y, h, lanes):
        # y: (h, lanes), rows = b*H + y, lanes = c*W + x  ->  (h//2, lanes//2).
        # Row rule r == 2q+parity is exact on batch-packed rows since the
        # per-sample row block size halves; lane rule stays inside a channel
        # block because the lane flattening is channel-major.
        def pool_rows(z, hh):
            return jnp.maximum(
                jnp.dot(rowsel(hh // 2, hh, 0), z, preferred_element_type=f32),
                jnp.dot(rowsel(hh // 2, hh, 1), z, preferred_element_type=f32))

        def pool_lanes(z, ll):
            return jnp.maximum(
                jnp.dot(z, colsel(ll, ll // 2, 0), preferred_element_type=f32),
                jnp.dot(z, colsel(ll, ll // 2, 1), preferred_element_type=f32))

        if h < lanes:                       # rows-first is cheaper
            return pool_lanes(pool_rows(y, h), lanes)
        return pool_rows(pool_lanes(y, lanes), h)

    # ---- Conv2d(1, 6, 5) + ReLU + MaxPool2d(2) ---------------------------
    # xsh_ref[ki] : (tb*24, 28) = rows (b, oy) of x shifted down by ki.
    acc1 = jnp.zeros((tb * 24, 144), f32)                # lanes = o*24 + ox
    for ki in range(5):
        acc1 = acc1 + jnp.dot(xsh_ref[ki], c1m_ref[ki],
                              preferred_element_type=f32)
    y1 = jnp.maximum(acc1 + c1b_ref[...], 0.0)           # (tb*24, 144)
    p1 = maxpool2x2(y1, tb * 24, 144)                    # (tb*12, 72), c*12+px

    # ---- Conv2d(6, 16, 5) + ReLU + MaxPool2d(2) --------------------------
    # r2sel_ref[ki] picks packed rows  b*12 + oy + ki  ->  (tb*8, 72).
    acc2 = jnp.zeros((tb * 8, 128), f32)                 # lanes = o*8 + ox
    for ki in range(5):
        rows = jnp.dot(r2sel_ref[ki], p1, preferred_element_type=f32)
        acc2 = acc2 + jnp.dot(rows, c2m_ref[ki], preferred_element_type=f32)
    y2 = jnp.maximum(acc2 + c2b_ref[...], 0.0)           # (tb*8, 128)
    p2 = maxpool2x2(y2, tb * 8, 128)                     # (tb*4, 64), o*4+px

    # ---- Classifier: 256->120 (ReLU) -> 84 (ReLU) -> 10 ------------------
    # fsel_ref[py] picks packed row  b*4 + py  ->  (tb, 64); wf1 was
    # row-permuted in the wrapper to consume the (py, o*4+px) layout directly.
    acc3 = jnp.zeros((tb, 120), f32)
    for py in range(4):
        rows = jnp.dot(fsel_ref[py], p2, preferred_element_type=f32)
        acc3 = acc3 + jnp.dot(rows, wf1_ref[py], preferred_element_type=f32)
    h1 = jnp.maximum(acc3 + bf1_ref[...], 0.0)           # (tb, 120)
    h2 = jnp.maximum(jnp.dot(h1, wf2_ref[...], preferred_element_type=f32)
                     + bf2_ref[...], 0.0)                # (tb, 84)
    o_ref[...] = (jnp.dot(h2, wf3_ref[...], preferred_element_type=f32)
                  + bf3_ref[...])                        # (tb, 10)


# ---------------------------------------------------------------------------
# Wrapper: one-time weight massaging (tiny tensors) + the single pallas_call
# ---------------------------------------------------------------------------
def _banded_conv_mats(w, in_w, out_w):
    """w: (Cout, Cin, K, K) -> (K, Cin*in_w, Cout*out_w) banded matrices with
    B[ki][c*in_w + j, o*out_w + ox] = w[o, c, ki, j - ox]  for 0 <= j-ox < K,
    so  conv(y)[oy, o*out_w+ox] = sum_ki (inp_rows(oy+ki) @ B[ki])[...]."""
    cout, cin, K, _ = w.shape
    kj = jnp.arange(in_w)[:, None] - jnp.arange(out_w)[None, :]     # (in_w, out_w)
    valid = (kj >= 0) & (kj < K)
    kj_c = jnp.clip(kj, 0, K - 1)
    wt = jnp.transpose(w, (2, 1, 0, 3))                             # (K, Cin, Cout, K)
    b = wt[:, :, :, kj_c]                                           # (K, Cin, Cout, in_w, out_w)
    b = jnp.where(valid[None, None, None], b, 0.0)
    b = jnp.transpose(b, (0, 1, 3, 2, 4))                           # (K, Cin, in_w, Cout, out_w)
    return b.reshape(K, cin * in_w, cout * out_w).astype(jnp.float32)


def convnet_forward(x, params):
    (w1, b1, w2, b2, wf1, bf1, wf2, bf2, wf3, bf3) = params
    B = x.shape[0]
    x3 = x.reshape(B, 28, 28).astype(jnp.float32)

    # --- choose samples-per-block (TB) and pad batch if needed ------------
    if B <= 16:
        TB, Bp = B, B
    else:
        TB = 8
        Bp = ((B + 7) // 8) * 8
        if Bp != B:
            x3 = jnp.concatenate(
                [x3, jnp.zeros((Bp - B, 28, 28), jnp.float32)], axis=0)
    G = Bp // TB

    # Row-shifted input copies: xsh[ki, b*24 + oy, :] = x[b, oy + ki, :].
    xsh = jnp.stack([x3[:, ki:ki + 24, :] for ki in range(5)],
                    axis=0).reshape(5, Bp * 24, 28)

    # Weight preparation (tiny; hoisted/CSE'd by jit).
    c1m = _banded_conv_mats(w1, 28, 24)                  # (5, 28, 144)
    c1b = jnp.repeat(b1, 24).reshape(1, 144)
    c2m = _banded_conv_mats(w2, 12, 8)                   # (5, 72, 128)
    c2b = jnp.repeat(b2, 8).reshape(1, 128)
    # PyTorch flatten order is (o, py, px); kernel produces (py, o*4+px) lanes,
    # so permute wf1 rows once instead of transposing activations.
    wf1p = jnp.transpose(wf1.reshape(16, 4, 4, 120), (1, 0, 2, 3)).reshape(4, 64, 120)
    bf1r = bf1.reshape(1, 120)
    bf2r = bf2.reshape(1, 84)
    bf3r = bf3.reshape(1, 10)

    # Static 0/1 selection matrices on batch-packed rows (constants).
    i = np.arange(TB * 8)
    r2sel_np = np.zeros((5, TB * 8, TB * 12), np.float32)
    for ki in range(5):
        r2sel_np[ki, i, (i // 8) * 12 + (i % 8) + ki] = 1.0
    ii = np.arange(TB)
    fsel_np = np.zeros((4, TB, TB * 4), np.float32)
    for py in range(4):
        fsel_np[py, ii, 4 * ii + py] = 1.0
    r2sel = jnp.asarray(r2sel_np)
    fsel = jnp.asarray(fsel_np)

    def whole(shape):
        n = len(shape)
        return pl.BlockSpec(shape, lambda g: (0,) * n)

    out = pl.pallas_call(
        convnet_kernel,
        out_shape=jax.ShapeDtypeStruct((Bp, 10), jnp.float32),
        grid=(G,),
        in_specs=[
            pl.BlockSpec((5, TB * 24, 28), lambda g: (0, g, 0)),
            whole((5, 28, 144)), whole((1, 144)),
            whole((5, 72, 128)), whole((1, 128)),
            whole((5, TB * 8, TB * 12)), whole((4, TB, TB * 4)),
            whole((4, 64, 120)), whole((1, 120)),
            whole((120, 84)),    whole((1, 84)),
            whole((84, 10)),     whole((1, 10)),
        ],
        out_specs=pl.BlockSpec((TB, 10), lambda g: (g, 0)),
        compiler_params=pltpu.CompilerParams(
            dimension_semantics=("parallel",)),
    )(xsh, c1m, c1b, c2m, c2b, r2sel, fsel, wf1p, bf1r, wf2, bf2r, wf3, bf3r)
    return out[:B]


# ---------------------------------------------------------------------------
# Pure-JAX reference for validation
# ---------------------------------------------------------------------------
def reference_forward(x, params):
    (w1, b1, w2, b2, wf1, bf1, wf2, bf2, wf3, bf3) = params
    dn = ("NCHW", "OIHW", "NCHW")

    def pool(y):
        return jax.lax.reduce_window(y, -jnp.inf, jax.lax.max,
                                     (1, 1, 2, 2), (1, 1, 2, 2), "VALID")

    y = jax.lax.conv_general_dilated(x, w1, (1, 1), "VALID",
                                     dimension_numbers=dn)
    y = jnp.maximum(y + b1[None, :, None, None], 0.0)
    y = pool(y)
    y = jax.lax.conv_general_dilated(y, w2, (1, 1), "VALID",
                                     dimension_numbers=dn)
    y = jnp.maximum(y + b2[None, :, None, None], 0.0)
    y = pool(y)
    y = y.reshape(y.shape[0], -1)
    y = jnp.maximum(y @ wf1 + bf1, 0.0)
    y = jnp.maximum(y @ wf2 + bf2, 0.0)
    return y @ wf3 + bf3


# ---------------------------------------------------------------------------
def init_params(key):
    def uinit(k, shape, fan_in):
        bound = 1.0 / np.sqrt(fan_in)
        return jax.random.uniform(k, shape, jnp.float32, -bound, bound)

    ks = jax.random.split(key, 10)
    w1 = uinit(ks[0], (6, 1, 5, 5), 25);    b1 = uinit(ks[1], (6,), 25)
    w2 = uinit(ks[2], (16, 6, 5, 5), 150);  b2 = uinit(ks[3], (16,), 150)
    wf1 = uinit(ks[4], (256, 120), 256);    bf1 = uinit(ks[5], (120,), 256)
    wf2 = uinit(ks[6], (120, 84), 120);     bf2 = uinit(ks[7], (84,), 120)
    wf3 = uinit(ks[8], (84, 10), 84);       bf3 = uinit(ks[9], (10,), 84)
    return (w1, b1, w2, b2, wf1, bf1, wf2, bf2, wf3, bf3)


if __name__ == "__main__":
    root = jax.random.PRNGKey(0)
    pkey, xkey = jax.random.split(root)
    params = init_params(pkey)
    fwd = jax.jit(convnet_forward)

    # LeNet geometry requires 28x28 inputs (flatten -> 16*4*4 = 256)
    x = jax.random.normal(xkey, (2, 1, 28, 28), jnp.float32)
    out = jax.block_until_ready(fwd(x, params))
    assert out.shape == (2, 10) and out.dtype == jnp.float32
    ref = jax.block_until_ready(reference_forward(x, params))
    np.testing.assert_allclose(np.asarray(out), np.asarray(ref),
                               rtol=1e-3, atol=1e-3)

    # Second shape: exercises the multi-step grid path (TB=8, grid=3).
    x2 = jax.random.normal(jax.random.PRNGKey(7), (24, 1, 28, 28), jnp.float32)
    out2 = jax.block_until_ready(fwd(x2, params))
    ref2 = jax.block_until_ready(reference_forward(x2, params))
    np.testing.assert_allclose(np.asarray(out2), np.asarray(ref2),
                               rtol=1e-3, atol=1e-3)

    print("KERNEL_OK")
</pallas_src>

<mosaic_0001>
module attributes {stable_mosaic.version = 11 : i64} {
  func.func @convnet_kernel(%arg0: i32, %arg1: memref<5x48x28xf32, #tpu.memory_space<vmem>>, %arg2: memref<5x28x144xf32, #tpu.memory_space<vmem>>, %arg3: memref<1x144xf32, #tpu.memory_space<vmem>>, %arg4: memref<5x72x128xf32, #tpu.memory_space<vmem>>, %arg5: memref<1x128xf32, #tpu.memory_space<vmem>>, %arg6: memref<5x16x24xf32, #tpu.memory_space<vmem>>, %arg7: memref<4x2x8xf32, #tpu.memory_space<vmem>>, %arg8: memref<4x64x120xf32, #tpu.memory_space<vmem>>, %arg9: memref<1x120xf32, #tpu.memory_space<vmem>>, %arg10: memref<120x84xf32, #tpu.memory_space<vmem>>, %arg11: memref<1x84xf32, #tpu.memory_space<vmem>>, %arg12: memref<84x10xf32, #tpu.memory_space<vmem>>, %arg13: memref<1x10xf32, #tpu.memory_space<vmem>>, %arg14: memref<2x10xf32, #tpu.memory_space<vmem>>) attributes {dimension_semantics = [#tpu.dimension_semantics<parallel>], iteration_bounds = array<i64: 1>, scalar_prefetch = 0 : i64, scratch_operands = 0 : i64, tpu.core_type = #tpu.core_type<tc>, window_params = [{transform_indices = @transform_0, window_bounds = array<i64: 5, 48, 28>}, {pipeline_mode = #tpu.pipeline_mode<synchronous>, transform_indices = @transform_1, window_bounds = array<i64: 5, 28, 144>}, {pipeline_mode = #tpu.pipeline_mode<synchronous>, transform_indices = @transform_2, window_bounds = array<i64: 1, 144>}, {pipeline_mode = #tpu.pipeline_mode<synchronous>, transform_indices = @transform_3, window_bounds = array<i64: 5, 72, 128>}, {pipeline_mode = #tpu.pipeline_mode<synchronous>, transform_indices = @transform_4, window_bounds = array<i64: 1, 128>}, {pipeline_mode = #tpu.pipeline_mode<synchronous>, transform_indices = @transform_5, window_bounds = array<i64: 5, 16, 24>}, {pipeline_mode = #tpu.pipeline_mode<synchronous>, transform_indices = @transform_6, window_bounds = array<i64: 4, 2, 8>}, {pipeline_mode = #tpu.pipeline_mode<synchronous>, transform_indices = @transform_7, window_bounds = array<i64: 4, 64, 120>}, {pipeline_mode = #tpu.pipeline_mode<synchronous>, transform_indices = @transform_8, window_bounds = array<i64: 1, 120>}, {pipeline_mode = #tpu.pipeline_mode<synchronous>, transform_indices = @transform_9, window_bounds = array<i64: 120, 84>}, {pipeline_mode = #tpu.pipeline_mode<synchronous>, transform_indices = @transform_10, window_bounds = array<i64: 1, 84>}, {pipeline_mode = #tpu.pipeline_mode<synchronous>, transform_indices = @transform_11, window_bounds = array<i64: 84, 10>}, {pipeline_mode = #tpu.pipeline_mode<synchronous>, transform_indices = @transform_12, window_bounds = array<i64: 1, 10>}, {transform_indices = @transform_13, window_bounds = array<i64: 2, 10>}]} {
    %cst = arith.constant 0.000000e+00 : f32
    %0 = vector.broadcast %cst : f32 to vector<48x144xf32>
    %c0 = arith.constant 0 : index
    %c0_0 = arith.constant 0 : index
    %c0_1 = arith.constant 0 : index
    %1 = vector.load %arg1[%c0, %c0_0, %c0_1] : memref<5x48x28xf32, #tpu.memory_space<vmem>>, vector<1x48x28xf32>
    %2 = vector.shape_cast %1 : vector<1x48x28xf32> to vector<48x28xf32>
    %c0_2 = arith.constant 0 : index
    %c0_3 = arith.constant 0 : index
    %c0_4 = arith.constant 0 : index
    %3 = vector.load %arg2[%c0_2, %c0_3, %c0_4] : memref<5x28x144xf32, #tpu.memory_space<vmem>>, vector<1x28x144xf32>
    %4 = vector.shape_cast %3 : vector<1x28x144xf32> to vector<28x144xf32>
    %cst_5 = arith.constant dense<0.000000e+00> : vector<48x144xf32>
    %5 = tpu.matmul %2, %4, %cst_5 {dimension_numbers = #tpu.dot_dimension_numbers<[1], [0], [0], [1], [0, 0, 1, 1], [], []>} : vector<48x28xf32>, vector<28x144xf32>, vector<48x144xf32> -> vector<48x144xf32>
    %6 = arith.addf %0, %5 : vector<48x144xf32>
    %c1 = arith.constant 1 : index
    %c0_6 = arith.constant 0 : index
    %c0_7 = arith.constant 0 : index
    %7 = vector.load %arg1[%c1, %c0_6, %c0_7] : memref<5x48x28xf32, #tpu.memory_space<vmem>>, vector<1x48x28xf32>
    %8 = vector.shape_cast %7 : vector<1x48x28xf32> to vector<48x28xf32>
    %c1_8 = arith.constant 1 : index
    %c0_9 = arith.constant 0 : index
    %c0_10 = arith.constant 0 : index
    %9 = vector.load %arg2[%c1_8, %c0_9, %c0_10] : memref<5x28x144xf32, #tpu.memory_space<vmem>>, vector<1x28x144xf32>
    %10 = vector.shape_cast %9 : vector<1x28x144xf32> to vector<28x144xf32>
    %cst_11 = arith.constant dense<0.000000e+00> : vector<48x144xf32>
    %11 = tpu.matmul %8, %10, %cst_11 {dimension_numbers = #tpu.dot_dimension_numbers<[1], [0], [0], [1], [0, 0, 1, 1], [], []>} : vector<48x28xf32>, vector<28x144xf32>, vector<48x144xf32> -> vector<48x144xf32>
    %12 = arith.addf %6, %11 : vector<48x144xf32>
    %c2 = arith.constant 2 : index
    %c0_12 = arith.constant 0 : index
    %c0_13 = arith.constant 0 : index
    %13 = vector.load %arg1[%c2, %c0_12, %c0_13] : memref<5x48x28xf32, #tpu.memory_space<vmem>>, vector<1x48x28xf32>
    %14 = vector.shape_cast %13 : vector<1x48x28xf32> to vector<48x28xf32>
    %c2_14 = arith.constant 2 : index
    %c0_15 = arith.constant 0 : index
    %c0_16 = arith.constant 0 : index
    %15 = vector.load %arg2[%c2_14, %c0_15, %c0_16] : memref<5x28x144xf32, #tpu.memory_space<vmem>>, vector<1x28x144xf32>
    %16 = vector.shape_cast %15 : vector<1x28x144xf32> to vector<28x144xf32>
    %cst_17 = arith.constant dense<0.000000e+00> : vector<48x144xf32>
    %17 = tpu.matmul %14, %16, %cst_17 {dimension_numbers = #tpu.dot_dimension_numbers<[1], [0], [0], [1], [0, 0, 1, 1], [], []>} : vector<48x28xf32>, vector<28x144xf32>, vector<48x144xf32> -> vector<48x144xf32>
    %18 = arith.addf %12, %17 : vector<48x144xf32>
    %c3 = arith.constant 3 : index
    %c0_18 = arith.constant 0 : index
    %c0_19 = arith.constant 0 : index
    %19 = vector.load %arg1[%c3, %c0_18, %c0_19] : memref<5x48x28xf32, #tpu.memory_space<vmem>>, vector<1x48x28xf32>
    %20 = vector.shape_cast %19 : vector<1x48x28xf32> to vector<48x28xf32>
    %c3_20 = arith.constant 3 : index
    %c0_21 = arith.constant 0 : index
    %c0_22 = arith.constant 0 : index
    %21 = vector.load %arg2[%c3_20, %c0_21, %c0_22] : memref<5x28x144xf32, #tpu.memory_space<vmem>>, vector<1x28x144xf32>
    %22 = vector.shape_cast %21 : vector<1x28x144xf32> to vector<28x144xf32>
    %cst_23 = arith.constant dense<0.000000e+00> : vector<48x144xf32>
    %23 = tpu.matmul %20, %22, %cst_23 {dimension_numbers = #tpu.dot_dimension_numbers<[1], [0], [0], [1], [0, 0, 1, 1], [], []>} : vector<48x28xf32>, vector<28x144xf32>, vector<48x144xf32> -> vector<48x144xf32>
    %24 = arith.addf %18, %23 : vector<48x144xf32>
    %c4 = arith.constant 4 : index
    %c0_24 = arith.constant 0 : index
    %c0_25 = arith.constant 0 : index
    %25 = vector.load %arg1[%c4, %c0_24, %c0_25] : memref<5x48x28xf32, #tpu.memory_space<vmem>>, vector<1x48x28xf32>
    %26 = vector.shape_cast %25 : vector<1x48x28xf32> to vector<48x28xf32>
    %c4_26 = arith.constant 4 : index
    %c0_27 = arith.constant 0 : index
    %c0_28 = arith.constant 0 : index
    %27 = vector.load %arg2[%c4_26, %c0_27, %c0_28] : memref<5x28x144xf32, #tpu.memory_space<vmem>>, vector<1x28x144xf32>
    %28 = vector.shape_cast %27 : vector<1x28x144xf32> to vector<28x144xf32>
    %cst_29 = arith.constant dense<0.000000e+00> : vector<48x144xf32>
    %29 = tpu.matmul %26, %28, %cst_29 {dimension_numbers = #tpu.dot_dimension_numbers<[1], [0], [0], [1], [0, 0, 1, 1], [], []>} : vector<48x28xf32>, vector<28x144xf32>, vector<48x144xf32> -> vector<48x144xf32>
    %30 = arith.addf %24, %29 : vector<48x144xf32>
    %c0_30 = arith.constant 0 : index
    %c0_31 = arith.constant 0 : index
    %31 = vector.load %arg3[%c0_30, %c0_31] : memref<1x144xf32, #tpu.memory_space<vmem>>, vector<1x144xf32>
    %32 = vector.broadcast %31 : vector<1x144xf32> to vector<48x144xf32>
    %33 = arith.addf %30, %32 : vector<48x144xf32>
    %cst_32 = arith.constant 0.000000e+00 : f32
    %34 = vector.broadcast %cst_32 : f32 to vector<48x144xf32>
    %35 = arith.maximumf %33, %34 : vector<48x144xf32>
    %36 = tpu.iota {dimensions = array<i32: 0>} : vector<24x48xi32>
    %37 = tpu.iota {dimensions = array<i32: 1>} : vector<24x48xi32>
    %c2_i32 = arith.constant 2 : i32
    %38 = vector.broadcast %c2_i32 : i32 to vector<24x48xi32>
    %39 = arith.muli %38, %36 : vector<24x48xi32>
    %c0_i32 = arith.constant 0 : i32
    %40 = vector.broadcast %c0_i32 : i32 to vector<24x48xi32>
    %41 = arith.addi %39, %40 : vector<24x48xi32>
    %42 = arith.cmpi eq, %37, %41 : vector<24x48xi32>
    %cst_33 = arith.constant 1.000000e+00 : f32
    %cst_34 = arith.constant 0.000000e+00 : f32
    %43 = vector.broadcast %cst_33 : f32 to vector<24x48xf32>
    %44 = vector.broadcast %cst_34 : f32 to vector<24x48xf32>
    %45 = arith.select %42, %43, %44 : vector<24x48xi1>, vector<24x48xf32>
    %cst_35 = arith.constant dense<0.000000e+00> : vector<24x144xf32>
    %46 = tpu.matmul %45, %35, %cst_35 {dimension_numbers = #tpu.dot_dimension_numbers<[1], [0], [0], [1], [0, 0, 1, 1], [], []>} : vector<24x48xf32>, vector<48x144xf32>, vector<24x144xf32> -> vector<24x144xf32>
    %47 = tpu.iota {dimensions = array<i32: 0>} : vector<24x48xi32>
    %48 = tpu.iota {dimensions = array<i32: 1>} : vector<24x48xi32>
    %c2_i32_36 = arith.constant 2 : i32
    %49 = vector.broadcast %c2_i32_36 : i32 to vector<24x48xi32>
    %50 = arith.muli %49, %47 : vector<24x48xi32>
    %c1_i32 = arith.constant 1 : i32
    %51 = vector.broadcast %c1_i32 : i32 to vector<24x48xi32>
    %52 = arith.addi %50, %51 : vector<24x48xi32>
    %53 = arith.cmpi eq, %48, %52 : vector<24x48xi32>
    %cst_37 = arith.constant 1.000000e+00 : f32
    %cst_38 = arith.constant 0.000000e+00 : f32
    %54 = vector.broadcast %cst_37 : f32 to vector<24x48xf32>
    %55 = vector.broadcast %cst_38 : f32 to vector<24x48xf32>
    %56 = arith.select %53, %54, %55 : vector<24x48xi1>, vector<24x48xf32>
    %cst_39 = arith.constant dense<0.000000e+00> : vector<24x144xf32>
    %57 = tpu.matmul %56, %35, %cst_39 {dimension_numbers = #tpu.dot_dimension_numbers<[1], [0], [0], [1], [0, 0, 1, 1], [], []>} : vector<24x48xf32>, vector<48x144xf32>, vector<24x144xf32> -> vector<24x144xf32>
    %58 = arith.maximumf %46, %57 : vector<24x144xf32>
    %59 = tpu.iota {dimensions = array<i32: 0>} : vector<144x72xi32>
    %60 = tpu.iota {dimensions = array<i32: 1>} : vector<144x72xi32>
    %c2_i32_40 = arith.constant 2 : i32
    %61 = vector.broadcast %c2_i32_40 : i32 to vector<144x72xi32>
    %62 = arith.muli %61, %60 : vector<144x72xi32>
    %c0_i32_41 = arith.constant 0 : i32
    %63 = vector.broadcast %c0_i32_41 : i32 to vector<144x72xi32>
    %64 = arith.addi %62, %63 : vector<144x72xi32>
    %65 = arith.cmpi eq, %59, %64 : vector<144x72xi32>
    %cst_42 = arith.constant 1.000000e+00 : f32
    %cst_43 = arith.constant 0.000000e+00 : f32
    %66 = vector.broadcast %cst_42 : f32 to vector<144x72xf32>
    %67 = vector.broadcast %cst_43 : f32 to vector<144x72xf32>
    %68 = arith.select %65, %66, %67 : vector<144x72xi1>, vector<144x72xf32>
    %cst_44 = arith.constant dense<0.000000e+00> : vector<24x72xf32>
    %69 = tpu.matmul %58, %68, %cst_44 {dimension_numbers = #tpu.dot_dimension_numbers<[1], [0], [0], [1], [0, 0, 1, 1], [], []>} : vector<24x144xf32>, vector<144x72xf32>, vector<24x72xf32> -> vector<24x72xf32>
    %70 = tpu.iota {dimensions = array<i32: 0>} : vector<144x72xi32>
    %71 = tpu.iota {dimensions = array<i32: 1>} : vector<144x72xi32>
    %c2_i32_45 = arith.constant 2 : i32
    %72 = vector.broadcast %c2_i32_45 : i32 to vector<144x72xi32>
    %73 = arith.muli %72, %71 : vector<144x72xi32>
    %c1_i32_46 = arith.constant 1 : i32
    %74 = vector.broadcast %c1_i32_46 : i32 to vector<144x72xi32>
    %75 = arith.addi %73, %74 : vector<144x72xi32>
    %76 = arith.cmpi eq, %70, %75 : vector<144x72xi32>
    %cst_47 = arith.constant 1.000000e+00 : f32
    %cst_48 = arith.constant 0.000000e+00 : f32
    %77 = vector.broadcast %cst_47 : f32 to vector<144x72xf32>
    %78 = vector.broadcast %cst_48 : f32 to vector<144x72xf32>
    %79 = arith.select %76, %77, %78 : vector<144x72xi1>, vector<144x72xf32>
    %cst_49 = arith.constant dense<0.000000e+00> : vector<24x72xf32>
    %80 = tpu.matmul %58, %79, %cst_49 {dimension_numbers = #tpu.dot_dimension_numbers<[1], [0], [0], [1], [0, 0, 1, 1], [], []>} : vector<24x144xf32>, vector<144x72xf32>, vector<24x72xf32> -> vector<24x72xf32>
    %81 = arith.maximumf %69, %80 : vector<24x72xf32>
    %cst_50 = arith.constant 0.000000e+00 : f32
    %82 = vector.broadcast %cst_50 : f32 to vector<16x128xf32>
    %c0_51 = arith.constant 0 : index
    %c0_52 = arith.constant 0 : index
    %c0_53 = arith.constant 0 : index
    %83 = vector.load %arg6[%c0_51, %c0_52, %c0_53] : memref<5x16x24xf32, #tpu.memory_space<vmem>>, vector<1x16x24xf32>
    %84 = vector.shape_cast %83 : vector<1x16x24xf32> to vector<16x24xf32>
    %cst_54 = arith.constant dense<0.000000e+00> : vector<16x72xf32>
    %85 = tpu.matmul %84, %81, %cst_54 {dimension_numbers = #tpu.dot_dimension_numbers<[1], [0], [0], [1], [0, 0, 1, 1], [], []>} : vector<16x24xf32>, vector<24x72xf32>, vector<16x72xf32> -> vector<16x72xf32>
    %c0_55 = arith.constant 0 : index
    %c0_56 = arith.constant 0 : index
    %c0_57 = arith.constant 0 : index
    %86 = vector.load %arg4[%c0_55, %c0_56, %c0_57] : memref<5x72x128xf32, #tpu.memory_space<vmem>>, vector<1x72x128xf32>
    %87 = vector.shape_cast %86 : vector<1x72x128xf32> to vector<72x128xf32>
    %cst_58 = arith.constant dense<0.000000e+00> : vector<16x128xf32>
    %88 = tpu.matmul %85, %87, %cst_58 {dimension_numbers = #tpu.dot_dimension_numbers<[1], [0], [0], [1], [0, 0, 1, 1], [], []>} : vector<16x72xf32>, vector<72x128xf32>, vector<16x128xf32> -> vector<16x128xf32>
    %89 = arith.addf %82, %88 : vector<16x128xf32>
    %c1_59 = arith.constant 1 : index
    %c0_60 = arith.constant 0 : index
    %c0_61 = arith.constant 0 : index
    %90 = vector.load %arg6[%c1_59, %c0_60, %c0_61] : memref<5x16x24xf32, #tpu.memory_space<vmem>>, vector<1x16x24xf32>
    %91 = vector.shape_cast %90 : vector<1x16x24xf32> to vector<16x24xf32>
    %cst_62 = arith.constant dense<0.000000e+00> : vector<16x72xf32>
    %92 = tpu.matmul %91, %81, %cst_62 {dimension_numbers = #tpu.dot_dimension_numbers<[1], [0], [0], [1], [0, 0, 1, 1], [], []>} : vector<16x24xf32>, vector<24x72xf32>, vector<16x72xf32> -> vector<16x72xf32>
    %c1_63 = arith.constant 1 : index
    %c0_64 = arith.constant 0 : index
    %c0_65 = arith.constant 0 : index
    %93 = vector.load %arg4[%c1_63, %c0_64, %c0_65] : memref<5x72x128xf32, #tpu.memory_space<vmem>>, vector<1x72x128xf32>
    %94 = vector.shape_cast %93 : vector<1x72x128xf32> to vector<72x128xf32>
    %cst_66 = arith.constant dense<0.000000e+00> : vector<16x128xf32>
    %95 = tpu.matmul %92, %94, %cst_66 {dimension_numbers = #tpu.dot_dimension_numbers<[1], [0], [0], [1], [0, 0, 1, 1], [], []>} : vector<16x72xf32>, vector<72x128xf32>, vector<16x128xf32> -> vector<16x128xf32>
    %96 = arith.addf %89, %95 : vector<16x128xf32>
    %c2_67 = arith.constant 2 : index
    %c0_68 = arith.constant 0 : index
    %c0_69 = arith.constant 0 : index
    %97 = vector.load %arg6[%c2_67, %c0_68, %c0_69] : memref<5x16x24xf32, #tpu.memory_space<vmem>>, vector<1x16x24xf32>
    %98 = vector.shape_cast %97 : vector<1x16x24xf32> to vector<16x24xf32>
    %cst_70 = arith.constant dense<0.000000e+00> : vector<16x72xf32>
    %99 = tpu.matmul %98, %81, %cst_70 {dimension_numbers = #tpu.dot_dimension_numbers<[1], [0], [0], [1], [0, 0, 1, 1], [], []>} : vector<16x24xf32>, vector<24x72xf32>, vector<16x72xf32> -> vector<16x72xf32>
    %c2_71 = arith.constant 2 : index
    %c0_72 = arith.constant 0 : index
    %c0_73 = arith.constant 0 : index
    %100 = vector.load %arg4[%c2_71, %c0_72, %c0_73] : memref<5x72x128xf32, #tpu.memory_space<vmem>>, vector<1x72x128xf32>
    %101 = vector.shape_cast %100 : vector<1x72x128xf32> to vector<72x128xf32>
    %cst_74 = arith.constant dense<0.000000e+00> : vector<16x128xf32>
    %102 = tpu.matmul %99, %101, %cst_74 {dimension_numbers = #tpu.dot_dimension_numbers<[1], [0], [0], [1], [0, 0, 1, 1], [], []>} : vector<16x72xf32>, vector<72x128xf32>, vector<16x128xf32> -> vector<16x128xf32>
    %103 = arith.addf %96, %102 : vector<16x128xf32>
    %c3_75 = arith.constant 3 : index
    %c0_76 = arith.constant 0 : index
    %c0_77 = arith.constant 0 : index
    %104 = vector.load %arg6[%c3_75, %c0_76, %c0_77] : memref<5x16x24xf32, #tpu.memory_space<vmem>>, vector<1x16x24xf32>
    %105 = vector.shape_cast %104 : vector<1x16x24xf32> to vector<16x24xf32>
    %cst_78 = arith.constant dense<0.000000e+00> : vector<16x72xf32>
    %106 = tpu.matmul %105, %81, %cst_78 {dimension_numbers = #tpu.dot_dimension_numbers<[1], [0], [0], [1], [0, 0, 1, 1], [], []>} : vector<16x24xf32>, vector<24x72xf32>, vector<16x72xf32> -> vector<16x72xf32>
    %c3_79 = arith.constant 3 : index
    %c0_80 = arith.constant 0 : index
    %c0_81 = arith.constant 0 : index
    %107 = vector.load %arg4[%c3_79, %c0_80, %c0_81] : memref<5x72x128xf32, #tpu.memory_space<vmem>>, vector<1x72x128xf32>
    %108 = vector.shape_cast %107 : vector<1x72x128xf32> to vector<72x128xf32>
    %cst_82 = arith.constant dense<0.000000e+00> : vector<16x128xf32>
    %109 = tpu.matmul %106, %108, %cst_82 {dimension_numbers = #tpu.dot_dimension_numbers<[1], [0], [0], [1], [0, 0, 1, 1], [], []>} : vector<16x72xf32>, vector<72x128xf32>, vector<16x128xf32> -> vector<16x128xf32>
    %110 = arith.addf %103, %109 : vector<16x128xf32>
    %c4_83 = arith.constant 4 : index
    %c0_84 = arith.constant 0 : index
    %c0_85 = arith.constant 0 : index
    %111 = vector.load %arg6[%c4_83, %c0_84, %c0_85] : memref<5x16x24xf32, #tpu.memory_space<vmem>>, vector<1x16x24xf32>
    %112 = vector.shape_cast %111 : vector<1x16x24xf32> to vector<16x24xf32>
    %cst_86 = arith.constant dense<0.000000e+00> : vector<16x72xf32>
    %113 = tpu.matmul %112, %81, %cst_86 {dimension_numbers = #tpu.dot_dimension_numbers<[1], [0], [0], [1], [0, 0, 1, 1], [], []>} : vector<16x24xf32>, vector<24x72xf32>, vector<16x72xf32> -> vector<16x72xf32>
    %c4_87 = arith.constant 4 : index
    %c0_88 = arith.constant 0 : index
    %c0_89 = arith.constant 0 : index
    %114 = vector.load %arg4[%c4_87, %c0_88, %c0_89] : memref<5x72x128xf32, #tpu.memory_space<vmem>>, vector<1x72x128xf32>
    %115 = vector.shape_cast %114 : vector<1x72x128xf32> to vector<72x128xf32>
    %cst_90 = arith.constant dense<0.000000e+00> : vector<16x128xf32>
    %116 = tpu.matmul %113, %115, %cst_90 {dimension_numbers = #tpu.dot_dimension_numbers<[1], [0], [0], [1], [0, 0, 1, 1], [], []>} : vector<16x72xf32>, vector<72x128xf32>, vector<16x128xf32> -> vector<16x128xf32>
    %117 = arith.addf %110, %116 : vector<16x128xf32>
    %c0_91 = arith.constant 0 : index
    %c0_92 = arith.constant 0 : index
    %118 = vector.load %arg5[%c0_91, %c0_92] : memref<1x128xf32, #tpu.memory_space<vmem>>, vector<1x128xf32>
    %119 = vector.broadcast %118 : vector<1x128xf32> to vector<16x128xf32>
    %120 = arith.addf %117, %119 : vector<16x128xf32>
    %cst_93 = arith.constant 0.000000e+00 : f32
    %121 = vector.broadcast %cst_93 : f32 to vector<16x128xf32>
    %122 = arith.maximumf %120, %121 : vector<16x128xf32>
    %123 = tpu.iota {dimensions = array<i32: 0>} : vector<8x16xi32>
    %124 = tpu.iota {dimensions = array<i32: 1>} : vector<8x16xi32>
    %c2_i32_94 = arith.constant 2 : i32
    %125 = vector.broadcast %c2_i32_94 : i32 to vector<8x16xi32>
    %126 = arith.muli %125, %123 : vector<8x16xi32>
    %c0_i32_95 = arith.constant 0 : i32
    %127 = vector.broadcast %c0_i32_95 : i32 to vector<8x16xi32>
    %128 = arith.addi %126, %127 : vector<8x16xi32>
    %129 = arith.cmpi eq, %124, %128 : vector<8x16xi32>
    %cst_96 = arith.constant 1.000000e+00 : f32
    %cst_97 = arith.constant 0.000000e+00 : f32
    %130 = vector.broadcast %cst_96 : f32 to vector<8x16xf32>
    %131 = vector.broadcast %cst_97 : f32 to vector<8x16xf32>
    %132 = arith.select %129, %130, %131 : vector<8x16xi1>, vector<8x16xf32>
    %cst_98 = arith.constant dense<0.000000e+00> : vector<8x128xf32>
    %133 = tpu.matmul %132, %122, %cst_98 {dimension_numbers = #tpu.dot_dimension_numbers<[1], [0], [0], [1], [0, 0, 1, 1], [], []>} : vector<8x16xf32>, vector<16x128xf32>, vector<8x128xf32> -> vector<8x128xf32>
    %134 = tpu.iota {dimensions = array<i32: 0>} : vector<8x16xi32>
    %135 = tpu.iota {dimensions = array<i32: 1>} : vector<8x16xi32>
    %c2_i32_99 = arith.constant 2 : i32
    %136 = vector.broadcast %c2_i32_99 : i32 to vector<8x16xi32>
    %137 = arith.muli %136, %134 : vector<8x16xi32>
    %c1_i32_100 = arith.constant 1 : i32
    %138 = vector.broadcast %c1_i32_100 : i32 to vector<8x16xi32>
    %139 = arith.addi %137, %138 : vector<8x16xi32>
    %140 = arith.cmpi eq, %135, %139 : vector<8x16xi32>
    %cst_101 = arith.constant 1.000000e+00 : f32
    %cst_102 = arith.constant 0.000000e+00 : f32
    %141 = vector.broadcast %cst_101 : f32 to vector<8x16xf32>
    %142 = vector.broadcast %cst_102 : f32 to vector<8x16xf32>
    %143 = arith.select %140, %141, %142 : vector<8x16xi1>, vector<8x16xf32>
    %cst_103 = arith.constant dense<0.000000e+00> : vector<8x128xf32>
    %144 = tpu.matmul %143, %122, %cst_103 {dimension_numbers = #tpu.dot_dimension_numbers<[1], [0], [0], [1], [0, 0, 1, 1], [], []>} : vector<8x16xf32>, vector<16x128xf32>, vector<8x128xf32> -> vector<8x128xf32>
    %145 = arith.maximumf %133, %144 : vector<8x128xf32>
    %146 = tpu.iota {dimensions = array<i32: 0>} : vector<128x64xi32>
    %147 = tpu.iota {dimensions = array<i32: 1>} : vector<128x64xi32>
    %c2_i32_104 = arith.constant 2 : i32
    %148 = vector.broadcast %c2_i32_104 : i32 to vector<128x64xi32>
    %149 = arith.muli %148, %147 : vector<128x64xi32>
    %c0_i32_105 = arith.constant 0 : i32
    %150 = vector.broadcast %c0_i32_105 : i32 to vector<128x64xi32>
    %151 = arith.addi %149, %150 : vector<128x64xi32>
    %152 = arith.cmpi eq, %146, %151 : vector<128x64xi32>
    %cst_106 = arith.constant 1.000000e+00 : f32
    %cst_107 = arith.constant 0.000000e+00 : f32
    %153 = vector.broadcast %cst_106 : f32 to vector<128x64xf32>
    %154 = vector.broadcast %cst_107 : f32 to vector<128x64xf32>
    %155 = arith.select %152, %153, %154 : vector<128x64xi1>, vector<128x64xf32>
    %cst_108 = arith.constant dense<0.000000e+00> : vector<8x64xf32>
    %156 = tpu.matmul %145, %155, %cst_108 {dimension_numbers = #tpu.dot_dimension_numbers<[1], [0], [0], [1], [0, 0, 1, 1], [], []>} : vector<8x128xf32>, vector<128x64xf32>, vector<8x64xf32> -> vector<8x64xf32>
    %157 = tpu.iota {dimensions = array<i32: 0>} : vector<128x64xi32>
    %158 = tpu.iota {dimensions = array<i32: 1>} : vector<128x64xi32>
    %c2_i32_109 = arith.constant 2 : i32
    %159 = vector.broadcast %c2_i32_109 : i32 to vector<128x64xi32>
    %160 = arith.muli %159, %158 : vector<128x64xi32>
    %c1_i32_110 = arith.constant 1 : i32
    %161 = vector.broadcast %c1_i32_110 : i32 to vector<128x64xi32>
    %162 = arith.addi %160, %161 : vector<128x64xi32>
    %163 = arith.cmpi eq, %157, %162 : vector<128x64xi32>
    %cst_111 = arith.constant 1.000000e+00 : f32
    %cst_112 = arith.constant 0.000000e+00 : f32
    %164 = vector.broadcast %cst_111 : f32 to vector<128x64xf32>
    %165 = vector.broadcast %cst_112 : f32 to vector<128x64xf32>
    %166 = arith.select %163, %164, %165 : vector<128x64xi1>, vector<128x64xf32>
    %cst_113 = arith.constant dense<0.000000e+00> : vector<8x64xf32>
    %167 = tpu.matmul %145, %166, %cst_113 {dimension_numbers = #tpu.dot_dimension_numbers<[1], [0], [0], [1], [0, 0, 1, 1], [], []>} : vector<8x128xf32>, vector<128x64xf32>, vector<8x64xf32> -> vector<8x64xf32>
    %168 = arith.maximumf %156, %167 : vector<8x64xf32>
    %cst_114 = arith.constant 0.000000e+00 : f32
    %169 = vector.broadcast %cst_114 : f32 to vector<2x120xf32>
    %c0_115 = arith.constant 0 : index
    %c0_116 = arith.constant 0 : index
    %c0_117 = arith.constant 0 : index
    %170 = vector.load %arg7[%c0_115, %c0_116, %c0_117] : memref<4x2x8xf32, #tpu.memory_space<vmem>>, vector<1x2x8xf32>
    %171 = vector.shape_cast %170 : vector<1x2x8xf32> to vector<2x8xf32>
    %cst_118 = arith.constant dense<0.000000e+00> : vector<2x64xf32>
    %172 = tpu.matmul %171, %168, %cst_118 {dimension_numbers = #tpu.dot_dimension_numbers<[1], [0], [0], [1], [0, 0, 1, 1], [], []>} : vector<2x8xf32>, vector<8x64xf32>, vector<2x64xf32> -> vector<2x64xf32>
    %c0_119 = arith.constant 0 : index
    %c0_120 = arith.constant 0 : index
    %c0_121 = arith.constant 0 : index
    %173 = vector.load %arg8[%c0_119, %c0_120, %c0_121] : memref<4x64x120xf32, #tpu.memory_space<vmem>>, vector<1x64x120xf32>
    %174 = vector.shape_cast %173 : vector<1x64x120xf32> to vector<64x120xf32>
    %cst_122 = arith.constant dense<0.000000e+00> : vector<2x120xf32>
    %175 = tpu.matmul %172, %174, %cst_122 {dimension_numbers = #tpu.dot_dimension_numbers<[1], [0], [0], [1], [0, 0, 1, 1], [], []>} : vector<2x64xf32>, vector<64x120xf32>, vector<2x120xf32> -> vector<2x120xf32>
    %176 = arith.addf %169, %175 : vector<2x120xf32>
    %c1_123 = arith.constant 1 : index
    %c0_124 = arith.constant 0 : index
    %c0_125 = arith.constant 0 : index
    %177 = vector.load %arg7[%c1_123, %c0_124, %c0_125] : memref<4x2x8xf32, #tpu.memory_space<vmem>>, vector<1x2x8xf32>
    %178 = vector.shape_cast %177 : vector<1x2x8xf32> to vector<2x8xf32>
    %cst_126 = arith.constant dense<0.000000e+00> : vector<2x64xf32>
    %179 = tpu.matmul %178, %168, %cst_126 {dimension_numbers = #tpu.dot_dimension_numbers<[1], [0], [0], [1], [0, 0, 1, 1], [], []>} : vector<2x8xf32>, vector<8x64xf32>, vector<2x64xf32> -> vector<2x64xf32>
    %c1_127 = arith.constant 1 : index
    %c0_128 = arith.constant 0 : index
    %c0_129 = arith.constant 0 : index
    %180 = vector.load %arg8[%c1_127, %c0_128, %c0_129] : memref<4x64x120xf32, #tpu.memory_space<vmem>>, vector<1x64x120xf32>
    %181 = vector.shape_cast %180 : vector<1x64x120xf32> to vector<64x120xf32>
    %cst_130 = arith.constant dense<0.000000e+00> : vector<2x120xf32>
    %182 = tpu.matmul %179, %181, %cst_130 {dimension_numbers = #tpu.dot_dimension_numbers<[1], [0], [0], [1], [0, 0, 1, 1], [], []>} : vector<2x64xf32>, vector<64x120xf32>, vector<2x120xf32> -> vector<2x120xf32>
    %183 = arith.addf %176, %182 : vector<2x120xf32>
    %c2_131 = arith.constant 2 : index
    %c0_132 = arith.constant 0 : index
    %c0_133 = arith.constant 0 : index
    %184 = vector.load %arg7[%c2_131, %c0_132, %c0_133] : memref<4x2x8xf32, #tpu.memory_space<vmem>>, vector<1x2x8xf32>
    %185 = vector.shape_cast %184 : vector<1x2x8xf32> to vector<2x8xf32>
    %cst_134 = arith.constant dense<0.000000e+00> : vector<2x64xf32>
    %186 = tpu.matmul %185, %168, %cst_134 {dimension_numbers = #tpu.dot_dimension_numbers<[1], [0], [0], [1], [0, 0, 1, 1], [], []>} : vector<2x8xf32>, vector<8x64xf32>, vector<2x64xf32> -> vector<2x64xf32>
    %c2_135 = arith.constant 2 : index
    %c0_136 = arith.constant 0 : index
    %c0_137 = arith.constant 0 : index
    %187 = vector.load %arg8[%c2_135, %c0_136, %c0_137] : memref<4x64x120xf32, #tpu.memory_space<vmem>>, vector<1x64x120xf32>
    %188 = vector.shape_cast %187 : vector<1x64x120xf32> to vector<64x120xf32>
    %cst_138 = arith.constant dense<0.000000e+00> : vector<2x120xf32>
    %189 = tpu.matmul %186, %188, %cst_138 {dimension_numbers = #tpu.dot_dimension_numbers<[1], [0], [0], [1], [0, 0, 1, 1], [], []>} : vector<2x64xf32>, vector<64x120xf32>, vector<2x120xf32> -> vector<2x120xf32>
    %190 = arith.addf %183, %189 : vector<2x120xf32>
    %c3_139 = arith.constant 3 : index
    %c0_140 = arith.constant 0 : index
    %c0_141 = arith.constant 0 : index
    %191 = vector.load %arg7[%c3_139, %c0_140, %c0_141] : memref<4x2x8xf32, #tpu.memory_space<vmem>>, vector<1x2x8xf32>
    %192 = vector.shape_cast %191 : vector<1x2x8xf32> to vector<2x8xf32>
    %cst_142 = arith.constant dense<0.000000e+00> : vector<2x64xf32>
    %193 = tpu.matmul %192, %168, %cst_142 {dimension_numbers = #tpu.dot_dimension_numbers<[1], [0], [0], [1], [0, 0, 1, 1], [], []>} : vector<2x8xf32>, vector<8x64xf32>, vector<2x64xf32> -> vector<2x64xf32>
    %c3_143 = arith.constant 3 : index
    %c0_144 = arith.constant 0 : index
    %c0_145 = arith.constant 0 : index
    %194 = vector.load %arg8[%c3_143, %c0_144, %c0_145] : memref<4x64x120xf32, #tpu.memory_space<vmem>>, vector<1x64x120xf32>
    %195 = vector.shape_cast %194 : vector<1x64x120xf32> to vector<64x120xf32>
    %cst_146 = arith.constant dense<0.000000e+00> : vector<2x120xf32>
    %196 = tpu.matmul %193, %195, %cst_146 {dimension_numbers = #tpu.dot_dimension_numbers<[1], [0], [0], [1], [0, 0, 1, 1], [], []>} : vector<2x64xf32>, vector<64x120xf32>, vector<2x120xf32> -> vector<2x120xf32>
    %197 = arith.addf %190, %196 : vector<2x120xf32>
    %c0_147 = arith.constant 0 : index
    %c0_148 = arith.constant 0 : index
    %198 = vector.load %arg9[%c0_147, %c0_148] : memref<1x120xf32, #tpu.memory_space<vmem>>, vector<1x120xf32>
    %199 = vector.broadcast %198 : vector<1x120xf32> to vector<2x120xf32>
    %200 = arith.addf %197, %199 : vector<2x120xf32>
    %cst_149 = arith.constant 0.000000e+00 : f32
    %201 = vector.broadcast %cst_149 : f32 to vector<2x120xf32>
    %202 = arith.maximumf %200, %201 : vector<2x120xf32>
    %c0_150 = arith.constant 0 : index
    %c0_151 = arith.constant 0 : index
    %203 = vector.load %arg10[%c0_150, %c0_151] : memref<120x84xf32, #tpu.memory_space<vmem>>, vector<120x84xf32>
    %cst_152 = arith.constant dense<0.000000e+00> : vector<2x84xf32>
    %204 = tpu.matmul %202, %203, %cst_152 {dimension_numbers = #tpu.dot_dimension_numbers<[1], [0], [0], [1], [0, 0, 1, 1], [], []>} : vector<2x120xf32>, vector<120x84xf32>, vector<2x84xf32> -> vector<2x84xf32>
    %c0_153 = arith.constant 0 : index
    %c0_154 = arith.constant 0 : index
    %205 = vector.load %arg11[%c0_153, %c0_154] : memref<1x84xf32, #tpu.memory_space<vmem>>, vector<1x84xf32>
    %206 = vector.broadcast %205 : vector<1x84xf32> to vector<2x84xf32>
    %207 = arith.addf %204, %206 : vector<2x84xf32>
    %cst_155 = arith.constant 0.000000e+00 : f32
    %208 = vector.broadcast %cst_155 : f32 to vector<2x84xf32>
    %209 = arith.maximumf %207, %208 : vector<2x84xf32>
    %c0_156 = arith.constant 0 : index
    %c0_157 = arith.constant 0 : index
    %210 = vector.load %arg12[%c0_156, %c0_157] : memref<84x10xf32, #tpu.memory_space<vmem>>, vector<84x10xf32>
    %cst_158 = arith.constant dense<0.000000e+00> : vector<2x10xf32>
    %211 = tpu.matmul %209, %210, %cst_158 {dimension_numbers = #tpu.dot_dimension_numbers<[1], [0], [0], [1], [0, 0, 1, 1], [], []>} : vector<2x84xf32>, vector<84x10xf32>, vector<2x10xf32> -> vector<2x10xf32>
    %c0_159 = arith.constant 0 : index
    %c0_160 = arith.constant 0 : index
    %212 = vector.load %arg13[%c0_159, %c0_160] : memref<1x10xf32, #tpu.memory_space<vmem>>, vector<1x10xf32>
    %213 = vector.broadcast %212 : vector<1x10xf32> to vector<2x10xf32>
    %214 = arith.addf %211, %213 : vector<2x10xf32>
    %c0_161 = arith.constant 0 : index
    %c0_162 = arith.constant 0 : index
    %215 = vector.load %arg14[%c0_161, %c0_162] : memref<2x10xf32, #tpu.memory_space<vmem>>, vector<2x10xf32>
    tpu.vector_store %arg14[%c0_161, %c0_162], %214 {strides = array<i32>} : memref<2x10xf32, #tpu.memory_space<vmem>>, vector<2x10xf32>,
    return
  }
  func.func @transform_0(%arg0: i32) -> (i32, i32, i32) {
    %c0_i32 = arith.constant 0 : i32
    %c0_i32_0 = arith.constant 0 : i32
    %c0_i32_1 = arith.constant 0 : i32
    return %c0_i32, %arg0, %c0_i32_0 : i32, i32, i32
  }
  func.func @transform_1(%arg0: i32) -> (i32, i32, i32) {
    %c0_i32 = arith.constant 0 : i32
    %c0_i32_0 = arith.constant 0 : i32
    %c0_i32_1 = arith.constant 0 : i32
    %c0_i32_2 = arith.constant 0 : i32
    return %c0_i32, %c0_i32_0, %c0_i32_1 : i32, i32, i32
  }
  func.func @transform_2(%arg0: i32) -> (i32, i32) {
    %c0_i32 = arith.constant 0 : i32
    %c0_i32_0 = arith.constant 0 : i32
    %c0_i32_1 = arith.constant 0 : i32
    return %c0_i32, %c0_i32_0 : i32, i32
  }
  func.func @transform_3(%arg0: i32) -> (i32, i32, i32) {
    %c0_i32 = arith.constant 0 : i32
    %c0_i32_0 = arith.constant 0 : i32
    %c0_i32_1 = arith.constant 0 : i32
    %c0_i32_2 = arith.constant 0 : i32
    return %c0_i32, %c0_i32_0, %c0_i32_1 : i32, i32, i32
  }
  func.func @transform_4(%arg0: i32) -> (i32, i32) {
    %c0_i32 = arith.constant 0 : i32
    %c0_i32_0 = arith.constant 0 : i32
    %c0_i32_1 = arith.constant 0 : i32
    return %c0_i32, %c0_i32_0 : i32, i32
  }
  func.func @transform_5(%arg0: i32) -> (i32, i32, i32) {
    %c0_i32 = arith.constant 0 : i32
    %c0_i32_0 = arith.constant 0 : i32
    %c0_i32_1 = arith.constant 0 : i32
    %c0_i32_2 = arith.constant 0 : i32
    return %c0_i32, %c0_i32_0, %c0_i32_1 : i32, i32, i32
  }
  func.func @transform_6(%arg0: i32) -> (i32, i32, i32) {
    %c0_i32 = arith.constant 0 : i32
    %c0_i32_0 = arith.constant 0 : i32
    %c0_i32_1 = arith.constant 0 : i32
    %c0_i32_2 = arith.constant 0 : i32
    return %c0_i32, %c0_i32_0, %c0_i32_1 : i32, i32, i32
  }
  func.func @transform_7(%arg0: i32) -> (i32, i32, i32) {
    %c0_i32 = arith.constant 0 : i32
    %c0_i32_0 = arith.constant 0 : i32
    %c0_i32_1 = arith.constant 0 : i32
    %c0_i32_2 = arith.constant 0 : i32
    return %c0_i32, %c0_i32_0, %c0_i32_1 : i32, i32, i32
  }
  func.func @transform_8(%arg0: i32) -> (i32, i32) {
    %c0_i32 = arith.constant 0 : i32
    %c0_i32_0 = arith.constant 0 : i32
    %c0_i32_1 = arith.constant 0 : i32
    return %c0_i32, %c0_i32_0 : i32, i32
  }
  func.func @transform_9(%arg0: i32) -> (i32, i32) {
    %c0_i32 = arith.constant 0 : i32
    %c0_i32_0 = arith.constant 0 : i32
    %c0_i32_1 = arith.constant 0 : i32
    return %c0_i32, %c0_i32_0 : i32, i32
  }
  func.func @transform_10(%arg0: i32) -> (i32, i32) {
    %c0_i32 = arith.constant 0 : i32
    %c0_i32_0 = arith.constant 0 : i32
    %c0_i32_1 = arith.constant 0 : i32
    return %c0_i32, %c0_i32_0 : i32, i32
  }
  func.func @transform_11(%arg0: i32) -> (i32, i32) {
    %c0_i32 = arith.constant 0 : i32
    %c0_i32_0 = arith.constant 0 : i32
    %c0_i32_1 = arith.constant 0 : i32
    return %c0_i32, %c0_i32_0 : i32, i32
  }
  func.func @transform_12(%arg0: i32) -> (i32, i32) {
    %c0_i32 = arith.constant 0 : i32
    %c0_i32_0 = arith.constant 0 : i32
    %c0_i32_1 = arith.constant 0 : i32
    return %c0_i32, %c0_i32_0 : i32, i32
  }
  func.func @transform_13(%arg0: i32) -> (i32, i32) {
    %c0_i32 = arith.constant 0 : i32
    %c0_i32_0 = arith.constant 0 : i32
    return %arg0, %c0_i32 : i32, i32
  }
}

</mosaic_0001>

<bundles_post_ra>
// kernel: convnet_forward.1
= control target key start
LH: loop header
LB: loop body
LE: loop exit
PB: predicated region body
PF: predicated region fallthrough
CT: control target
= control target key end

     0   :  { %vm5833_vm0 = vcmask 1043456   ;;  %v4640_v7 = vmov 0.0   ;;  %vm4641_vm1 = vmmov 1   ;;  %vm75_vm3 = vcmask 228352   ;;  %s5819_s0 = inlined_call_operand.vmem [shape: f32[5,48,28], index: 0, kind: input, shape index: {}]   ;;  %s5820_s1 = inlined_call_operand.vmem [shape: f32[5,28,144], index: 1, kind: input, shape index: {}]   ;;  %s5821_s2 = inlined_call_operand.vmem [shape: f32[1,144], index: 2, kind: input, shape index: {}]   ;;  %s5822_s3 = inlined_call_operand.vmem [shape: f32[5,72,128], index: 3, kind: input, shape index: {}]   ;;  %s5823_s4 = inlined_call_operand.vmem [shape: f32[1,128], index: 4, kind: input, shape index: {}]   ;;  %s5824_s5 = inlined_call_operand.vmem [shape: f32[5,16,24], index: 5, kind: input, shape index: {}]   ;;  %s5825_s6 = inlined_call_operand.vmem [shape: f32[4,2,8], index: 6, kind: input, shape index: {}]   ;;  %s5826_s7 = inlined_call_operand.vmem [shape: f32[4,64,120], index: 7, kind: input, shape index: {}]   ;;  %s5827_s8 = inlined_call_operand.vmem [shape: f32[1,120], index: 8, kind: input, shape index: {}]   ;;  %s5828_s9 = inlined_call_operand.vmem [shape: f32[120,84], index: 9, kind: input, shape index: {}]   ;;  %s5829_s10 = inlined_call_operand.vmem [shape: f32[1,84], index: 10, kind: input, shape index: {}]   ;;  %s5830_s11 = inlined_call_operand.vmem [shape: f32[84,10], index: 11, kind: input, shape index: {}]   ;;  %s5831_s12 = inlined_call_operand.vmem [shape: f32[1,10], index: 12, kind: input, shape index: {}]   ;;  %s5832_s13 = inlined_call_operand.hbm [shape: f32[2,10], index: 13, kind: output, shape index: {}]  }
   0x1   :  { %v3331_v0 = vld [vmem:[%s5820_s1 + $0x48] sm:$0xff]  ;;  %v3333_v1 = vld [vmem:[%s5820_s1 + $0x58] sm:$0xff]  ;;  %v3330_v2 = vld [vmem:[%s5820_s1 + $0x40] sm:$0xff]  ;;  %165 = vmatprep.mubr.f32.mxu0 %v4640_v7  ;;  %911 = vmatprep.mubr.f32.mxu1 %v4640_v7 }
   0x2   :  { %v4188_v3 = vpack.c.bf16 %v3333_v1, %v3331_v0  ;;  %v3332_v4 = vld [vmem:[%s5820_s1 + $0x50] sm:$0xff]  ;;  %v3335_v5 = vld [vmem:[%s5820_s1 + $0x68] sm:$0xff]  ;;  %v3337_v6 = vld [vmem:[%s5820_s1 + $0x78] sm:$0xf] }
   0x3   :  { %v4190_v8 = vpack.c.bf16 %v3332_v4, %v3330_v2  ;;  %v4192_v9 = vpack.c.bf16 %v3337_v6, %v3335_v5  ;;  %vm4737_vm2 = vmpackc.low %vm5833_vm0, %vm4641_vm1  ;;  %v3334_v11 = vld [vmem:[%s5820_s1 + $0x60] sm:$0xff]  ;;  %v3336_v12 = vld [vmem:[%s5820_s1 + $0x70] sm:$0xf] }
   0x4   :  { %4189 = vmatprep.subr.bf16.mxu0 %v4188_v3  ;;  %v52_v13 = vld [vmem:[%s5820_s1 + $0x8] sm:$0xff]  ;;  %v4195_v14 = vpack.c.bf16 %v3336_v12, %v3334_v11  ;;  %v54_v15 = vld [vmem:[%s5820_s1 + $0x18] sm:$0xff]  ;;  %v51_v17 = vld [vmem:[%s5820_s1] sm:$0xff] }
   0x5   :  { %4191 = vmatpush1.bf16.msra.mxu0 %v4190_v8  ;;  %v4198_v16 = vpack.c.bf16 %v54_v15, %v52_v13  ;;  %v53_v18 = vld [vmem:[%s5820_s1 + $0x10] sm:$0xff]  ;;  %v56_v19 = vld [vmem:[%s5820_s1 + $0x28] sm:$0xff]  ;;  %v58_v20 = vld [vmem:[%s5820_s1 + $0x38] sm:$0xf] }
   0x6   :  { %4194 = vmatprep.subr.msk.bf16.mxu0 %vm4737_vm2, %v4192_v9  ;;  %v3324_v21 = vld [vmem:[%s5819_s0 + $0x30] sm:$0xff]  ;;  %v4200_v22 = vpack.c.bf16 %v53_v18, %v51_v17  ;;  %v4202_v23 = vpack.c.bf16 %v58_v20, %v56_v19  ;;  %v55_v24 = vld [vmem:[%s5820_s1 + $0x20] sm:$0xff]  ;;  %v3361_v26 = vld [vmem:[%s5820_s1 + $0x88] sm:$0xff] }
   0x7   :  { %v57_v25 = vld [vmem:[%s5820_s1 + $0x30] sm:$0xf]  ;;  %v3363_v27 = vld [vmem:[%s5820_s1 + $0x98] sm:$0xff]  ;;  %v3326_v31 = vld [vmem:[%s5819_s0 + $0x40] sm:$0xff] }
   0x8   :  { %v3325_v28 = vld [vmem:[%s5819_s0 + $0x38] sm:$0xff]  ;;  %v4205_v29 = vpack.c.bf16 %v57_v25, %v55_v24  ;;  %v4208_v30 = vpack.c.bf16 %v3363_v27, %v3361_v26  ;;  %v3327_v32 = vld [vmem:[%s5819_s0 + $0x48] sm:$0xff] }
   0x9   :  { %4197 = vmatpush1.bf16.msk.msra.mxu0 %vm4737_vm2, %v4195_v14 }
   0xa   :  { %4199 = vmatprep.subr.bf16.mxu0 %v4198_v16 }
   0xc   :  { %3340 = vmatmul.mubr.msk.f32.vlgmr.msra.gmra.mrb[0].mxu0 %vm75_vm3, %v3324_v21 }
   0xd   :  { %171 = vmatprep.mubr.f32.mxu0 %v4640_v7  ;;  %4201 = vmatpush1.bf16.msra.mxu0 %v4200_v22 }
   0xe   :  { %4204 = vmatprep.subr.msk.bf16.mxu0 %vm4737_vm2, %v4202_v23 }
  0x10   :  { %3341 = vmatmul.mubr.msk.f32.gmra.mrb[2].mxu0 %vm75_vm3, %v3325_v28 }
  0x11   :  { %177 = vmatprep.mubr.f32.mxu0 %v4640_v7  ;;  %4207 = vmatpush1.bf16.msk.msra.mxu0 %vm4737_vm2, %v4205_v29 }
  0x12   :  { %4209 = vmatprep.subr.bf16.mxu0 %v4208_v30 }
  0x14   :  { %3342 = vmatmul.mubr.msk.f32.gmra.mrb[4].mxu0 %vm75_vm3, %v3326_v31 }
  0x15   :  { %183 = vmatprep.mubr.f32.mxu0 %v4640_v7 }
  0x18   :  { %3343 = vmatmul.mubr.msk.f32.gmra.mrb[6].mxu0 %vm75_vm3, %v3327_v32 }
  0x19   :  { %18 = vsyncpa [#allocation3], 0  ;;  %189 = vmatprep.mubr.f32.mxu0 %v4640_v7  ;;  %v3328_v33 = vld [vmem:[%s5819_s0 + $0x50] sm:$0xff]  ;;  %v3329_v34 = vld [vmem:[%s5819_s0 + $0x58] sm:$0xff]  ;;  %v788_v29 = vlaneseq  ;;  %vm837_vm5 = vcmask 392192   ;;  %s4645_s23 = smov [#allocation2]  }
  0x1a   :  { %v3360_v35 = vld [vmem:[%s5820_s1 + $0x80] sm:$0xff]  ;;  %v3362_v36 = vld [vmem:[%s5820_s1 + $0x90] sm:$0xff]  ;;  %v3365_v37 = vld [vmem:[%s5820_s1 + $0xa8] sm:$0xff]  ;;  %s3316_s24 = sshll.u32 %s4645_s23, 4  ;;  %s3317_s24 = int_to_ptr.vmem [resolvable:$true] %s3316_s24 }
  0x1b   :  { %v3367_v38 = vld [vmem:[%s5820_s1 + $0xb8] sm:$0xf]  ;;  %v45_v39 = vld [vmem:[%s5819_s0] sm:$0xff]  ;;  %v4210_v40 = vpack.c.bf16 %v3362_v36, %v3360_v35  ;;  %v3366_v43 = vld [vmem:[%s5820_s1 + $0xb0] sm:$0xf]  ;;  %v5012_v30 = vshrl.u32 %v788_v29, 7  ;;  %p4621_p1 = scmp.lt.s32.totalorder %s3317_s24, %s3317_s24 }
  0x1c   :  { %3344 = vmatmul.mubr.msk.f32.gmra.mrb[8].mxu0 %vm75_vm3, %v3328_v33  ;;  %v4212_v41 = vpack.c.bf16 %v3367_v38, %v3365_v37  ;;  %v3364_v42 = vld [vmem:[%s5820_s1 + $0xa0] sm:$0xff]  ;;  %v3383_v44 = vld [vmem:[%s5820_s1 + $0xc8] sm:$0xff]  ;;  %v3385_v45 = vld [vmem:[%s5820_s1 + $0xd8] sm:$0xff] }
  0x1d   :  { %195 = vmatprep.mubr.f32.mxu0 %v4640_v7  ;;  %v46_v46 = vld [vmem:[%s5819_s0 + $0x8] sm:$0xff]  ;;  %v4215_v47 = vpack.c.bf16 %v3366_v43, %v3364_v42  ;;  %v4218_v48 = vpack.c.bf16 %v3385_v45, %v3383_v44  ;;  %v47_v49 = vld [vmem:[%s5819_s0 + $0x10] sm:$0xff]  ;;  %v48_v50 = vld [vmem:[%s5819_s0 + $0x18] sm:$0xff]  ;;  %v790_v31 = vsub.s32 0, %v5012_v30  ;;  %v794_v33 = vsub.s32 1, %v5012_v30 }
  0x1e   :  { %v49_v51 = vld [vmem:[%s5819_s0 + $0x20] sm:$0xff]  ;;  %v50_v52 = vld [vmem:[%s5819_s0 + $0x28] sm:$0xff]  ;;  %v3384_v54 = vld [vmem:[%s5820_s1 + $0xd0] sm:$0xff] }
  0x1f   :  { %v3382_v53 = vld [vmem:[%s5820_s1 + $0xc0] sm:$0xff]  ;;  %v3387_v55 = vld [vmem:[%s5820_s1 + $0xe8] sm:$0xff]  ;;  %v3389_v56 = vld [vmem:[%s5820_s1 + $0xf8] sm:$0xf] }
  0x20   :  { %3345 = vmatmul.mubr.msk.f32.gmra.mrb[10].mxu0 %vm75_vm3, %v3329_v34  ;;  %v3354_v57 = vld [vmem:[%s5819_s0 + $0x60] sm:$0xff]  ;;  %v4220_v58 = vpack.c.bf16 %v3384_v54, %v3382_v53  ;;  %v4222_v59 = vpack.c.bf16 %v3389_v56, %v3387_v55  ;;  %v3388_v61 = vld [vmem:[%s5820_s1 + $0xf0] sm:$0xf]  ;;  %v3405_v62 = vld [vmem:[%s5820_s1 + $0x108] sm:$0xff] }
  0x21   :  { %290 = vmatprep.mubr.f32.mxu0 %v4640_v7  ;;  %v3386_v60 = vld [vmem:[%s5820_s1 + $0xe0] sm:$0xff]  ;;  %v3407_v63 = vld [vmem:[%s5820_s1 + $0x118] sm:$0xff]  ;;  %v3355_v0 = vld [vmem:[%s5819_s0 + $0x68] sm:$0xff] }
  0x22   :  { %v4225_v1 = vpack.c.bf16 %v3388_v61, %v3386_v60  ;;  %v4228_v2 = vpack.c.bf16 %v3407_v63, %v3405_v62  ;;  %v3356_v3 = vld [vmem:[%s5819_s0 + $0x70] sm:$0xff]  ;;  %v3357_v4 = vld [vmem:[%s5819_s0 + $0x78] sm:$0xff]  ;;  %v3358_v5 = vld [vmem:[%s5819_s0 + $0x80] sm:$0xff] }
  0x23   :  { %v3359_v6 = vld [vmem:[%s5819_s0 + $0x88] sm:$0xff]  ;;  %v3404_v8 = vld [vmem:[%s5820_s1 + $0x100] sm:$0xff]  ;;  %v3406_v9 = vld [vmem:[%s5820_s1 + $0x110] sm:$0xff] }
  0x24   :  { %3348 = vmatmul.mubr.msk.f32.vlgmr.msra.gmra.mrb[0].mxu0 %vm75_vm3, %v45_v39  ;;  %v3409_v11 = vld [vmem:[%s5820_s1 + $0x128] sm:$0xff]  ;;  %v3411_v12 = vld [vmem:[%s5820_s1 + $0x138] sm:$0xf]  ;;  %v3376_v13 = vld [vmem:[%s5819_s0 + $0x90] sm:$0xff]  ;;  %v4230_v14 = vpack.c.bf16 %v3406_v9, %v3404_v8  ;;  %v5019_v9 = vand.u32 127, %v788_v29 }
  0x25   :  { %296 = vmatprep.mubr.f32.mxu0 %v4640_v7  ;;  %4211 = vmatpush1.bf16.msra.mxu0 %v4210_v40  ;;  %v4232_v15 = vpack.c.bf16 %v3411_v12, %v3409_v11  ;;  %v3408_v16 = vld [vmem:[%s5820_s1 + $0x120] sm:$0xff]  ;;  %v3410_v17 = vld [vmem:[%s5820_s1 + $0x130] sm:$0xf]  ;;  %v3377_v18 = vld [vmem:[%s5819_s0 + $0x98] sm:$0xff]  ;;  %v828_v11 = vmul.u32 2, %v5012_v30  ;;  %v5023_v12 = vadd.s32 8, %v5012_v30 }
  0x26   :  { %4214 = vmatprep.subr.msk.bf16.mxu0 %vm4737_vm2, %v4212_v41  ;;  %v4235_v19 = vpack.c.bf16 %v3410_v17, %v3408_v16  ;;  %v3378_v20 = vld [vmem:[%s5819_s0 + $0xa0] sm:$0xff]  ;;  %v3379_v21 = vld [vmem:[%s5819_s0 + $0xa8] sm:$0xff]  ;;  %v3380_v22 = vld [vmem:[%s5819_s0 + $0xb0] sm:$0xff] }
  0x27   :  { %v3381_v10 = vld [vmem:[%s5819_s0 + $0xb8] sm:$0xff]  ;;  %v3398_v23 = vld [vmem:[%s5819_s0 + $0xc0] sm:$0xff]  ;;  %v3399_v24 = vld [vmem:[%s5819_s0 + $0xc8] sm:$0xff]  ;;  %vm831_vm4 = vcmp.eq.s32.totalorder %v5019_v9, %v828_v11 }
  0x28   :  { %3349 = vmatmul.mubr.msk.f32.gmra.mrb[2].mxu0 %vm75_vm3, %v46_v46  ;;  %v3400_v25 = vld [vmem:[%s5819_s0 + $0xd0] sm:$0xff]  ;;  %v3401_v26 = vld [vmem:[%s5819_s0 + $0xd8] sm:$0xff]  ;;  %v3402_v27 = vld [vmem:[%s5819_s0 + $0xe0] sm:$0xff] }
  0x29   :  { %302 = vmatprep.mubr.f32.mxu0 %v4640_v7  ;;  %4217 = vmatpush1.bf16.msk.msra.mxu0 %vm4737_vm2, %v4215_v47  ;;  %v3403_v28 = vld [vmem:[%s5819_s0 + $0xe8] sm:$0xff]  ;;  %v786_v32 = vld [vmem:[%s5821_s2] sm:$0x3] }
  0x2a   :  { %4219 = vmatprep.subr.bf16.mxu0 %v4218_v48  ;;  %v791_v34 = vrot.slane %v786_v32, %v790_v31  ;;  %v795_v36 = vrot.slane %v786_v32, %v794_v33  ;;  %v4642_v31 = vmov 0.0|0.0   ;;  %v5070_v33 = vadd.s32 32, %v5012_v30 }
  0x2c   :  { %3350 = vmatmul.mubr.msk.f32.gmra.mrb[4].mxu0 %vm75_vm3, %v47_v49 }
  0x2d   :  { %308 = vmatprep.mubr.f32.mxu0 %v4640_v7 }
  0x30   :  { %3351 = vmatmul.mubr.msk.f32.gmra.mrb[6].mxu0 %vm75_vm3, %v48_v50 }
  0x31   :  { %314 = vmatprep.mubr.f32.mxu0 %v4640_v7 }
  0x34   :  { %3352 = vmatmul.mubr.msk.f32.gmra.mrb[8].mxu0 %vm75_vm3, %v49_v51 }
  0x35   :  { %320 = vmatprep.mubr.f32.mxu0 %v4640_v7 }
  0x38   :  { %3353 = vmatmul.mubr.msk.f32.gmra.mrb[10].mxu0 %vm75_vm3, %v50_v52 }
  0x39   :  { %431 = vmatprep.mubr.f32.mxu0 %v4640_v7 }
  0x3c   :  { %3370 = vmatmul.mubr.msk.f32.vlgmr.msra.gmra.mrb[0].mxu0 %vm75_vm3, %v3354_v57 }
  0x3d   :  { %437 = vmatprep.mubr.f32.mxu0 %v4640_v7  ;;  %4221 = vmatpush1.bf16.msra.mxu0 %v4220_v58 }
  0x3e   :  { %4224 = vmatprep.subr.msk.bf16.mxu0 %vm4737_vm2, %v4222_v59 }
  0x40   :  { %3371 = vmatmul.mubr.msk.f32.gmra.mrb[2].mxu0 %vm75_vm3, %v3355_v0 }
  0x41   :  { %443 = vmatprep.mubr.f32.mxu0 %v4640_v7  ;;  %4227 = vmatpush1.bf16.msk.msra.mxu0 %vm4737_vm2, %v4225_v1 }
  0x42   :  { %4229 = vmatprep.subr.bf16.mxu0 %v4228_v2 }
  0x44   :  { %3372 = vmatmul.mubr.msk.f32.gmra.mrb[4].mxu0 %vm75_vm3, %v3356_v3 }
  0x45   :  { %449 = vmatprep.mubr.f32.mxu0 %v4640_v7 }
  0x48   :  { %3373 = vmatmul.mubr.msk.f32.gmra.mrb[6].mxu0 %vm75_vm3, %v3357_v4 }
  0x49   :  { %455 = vmatprep.mubr.f32.mxu0 %v4640_v7 }
  0x4c   :  { %3374 = vmatmul.mubr.msk.f32.gmra.mrb[8].mxu0 %vm75_vm3, %v3358_v5 }
  0x4d   :  { %461 = vmatprep.mubr.f32.mxu0 %v4640_v7 }
  0x50   :  { %3375 = vmatmul.mubr.msk.f32.gmra.mrb[10].mxu0 %vm75_vm3, %v3359_v6 }
  0x51   :  { %584 = vmatprep.mubr.f32.mxu0 %v4640_v7 }
  0x54   :  { %3392 = vmatmul.mubr.msk.f32.vlgmr.msra.gmra.mrb[0].mxu0 %vm75_vm3, %v3376_v13 }
  0x55   :  { %590 = vmatprep.mubr.f32.mxu0 %v4640_v7  ;;  %4231 = vmatpush1.bf16.msra.mxu0 %v4230_v14 }
  0x56   :  { %4234 = vmatprep.subr.msk.bf16.mxu0 %vm4737_vm2, %v4232_v15 }
  0x58   :  { %3393 = vmatmul.mubr.msk.f32.gmra.mrb[2].mxu0 %vm75_vm3, %v3377_v18 }
  0x59   :  { %596 = vmatprep.mubr.f32.mxu0 %v4640_v7  ;;  %4237 = vmatpush1.bf16.msk.msra.mxu0 %vm4737_vm2, %v4235_v19  ;;  %v829_v19 = vmul.u32 2, %v5023_v12 }
  0x5b   :  { %vm832_vm6 = vcmp.eq.s32.totalorder %v5019_v9, %v829_v19 }
  0x5c   :  { %3394 = vmatmul.mubr.msk.f32.gmra.mrb[4].mxu0 %vm75_vm3, %v3378_v20  ;;  %v5028_v20 = vadd.s32 16, %v5012_v30 }
  0x5d   :  { %602 = vmatprep.mubr.f32.mxu0 %v4640_v7 }
  0x60   :  { %3395 = vmatmul.mubr.msk.f32.gmra.mrb[6].mxu0 %vm75_vm3, %v3379_v21  ;;  %v5031_v21 = vsel %vm831_vm4, 1.0, %v4640_v7 }
  0x61   :  { %608 = vmatprep.mubr.f32.mxu0 %v4640_v7 }
  0x64   :  { %3396 = vmatmul.mubr.msk.f32.gmra.mrb[8].mxu0 %vm75_vm3, %v3380_v22  ;;  %v830_v22 = vmul.u32 2, %v5028_v20 }
  0x65   :  { %614 = vmatprep.mubr.f32.mxu0 %v4640_v7 }
  0x66   :  { %vm833_vm7 = vcmp.eq.s32.totalorder %v5019_v9, %v830_v22  ;;  %v932_v29 = vadd.s32 1, %v830_v22 }
  0x68   :  { %3397 = vmatmul.mubr.msk.f32.gmra.mrb[10].mxu0 %vm75_vm3, %v3381_v10  ;;  %v835_v10 = vsel %vm832_vm6, 1.0, %v4640_v7  ;;  %vm935_vm15 = vcmp.eq.s32.totalorder %v5019_v9, %v932_v29 }
  0x69   :  { %737 = vmatprep.mubr.f32.mxu0 %v4640_v7 }
  0x6c   :  { %3414 = vmatmul.mubr.msk.f32.vlgmr.msra.gmra.mrb[0].mxu0 %vm75_vm3, %v3398_v23  ;;  %v930_v23 = vadd.s32 1, %v828_v11 }
  0x6d   :  { %743 = vmatprep.mubr.f32.mxu0 %v4640_v7 }
  0x6e   :  { %vm933_vm8 = vcmp.eq.s32.totalorder %v5019_v9, %v930_v23  ;;  %v3474_v23 = vld [vmem:[%s5822_s3 + $0x48] sm:$0xff] }
  0x70   :  { %3415 = vmatmul.mubr.msk.f32.gmra.mrb[2].mxu0 %vm75_vm3, %v3399_v24  ;;  %v5041_v24 = vmul.u32 2, %v5019_v9 }
  0x71   :  { %749 = vmatprep.mubr.f32.mxu0 %v4640_v7 }
  0x72   :  { %vm1053_vm9 = vcmp.eq.s32.totalorder %v5012_v30, %v5041_v24  ;;  %vm1054_vm10 = vcmp.eq.s32.totalorder %v5023_v12, %v5041_v24  ;;  %vm1055_vm13 = vcmp.eq.s32.totalorder %v5028_v20, %v5041_v24  ;;  %vm1057_vm2 = vcmp.eq.s32.totalorder %v5070_v33, %v5041_v24 }
  0x73   :  { %vm5061_vm12 = vmpackc.low %vm1054_vm10, %vm1053_vm9 }
  0x74   :  { %3416 = vmatmul.mubr.msk.f32.gmra.mrb[4].mxu0 %vm75_vm3, %v3400_v25  ;;  %v836_v25 = vsel %vm833_vm7, 1.0, %v4640_v7 }
  0x75   :  { %755 = vmatprep.mubr.f32.mxu0 %v4640_v7 }
  0x78   :  { %3417 = vmatmul.mubr.msk.f32.gmra.mrb[6].mxu0 %vm75_vm3, %v3401_v26  ;;  %v931_v26 = vadd.s32 1, %v829_v19 }
  0x79   :  { %761 = vmatprep.mubr.f32.mxu0 %v4640_v7 }
  0x7a   :  { %vm934_vm11 = vcmp.eq.s32.totalorder %v5019_v9, %v931_v26  ;;  %v5866_v9 = vmov 0 }
  0x7c   :  { %3418 = vmatmul.mubr.msk.f32.gmra.mrb[8].mxu0 %vm75_vm3, %v3402_v27  ;;  %v5052_v27 = vadd.s32 24, %v5012_v30 }
  0x7d   :  { %767 = vmatprep.mubr.f32.mxu0 %v4640_v7 }
  0x7e   :  { %vm1056_vm14 = vcmp.eq.s32.totalorder %v5052_v27, %v5041_v24 }
  0x7f   :  { %vm5084_vm1 = vmpackc.low %vm1056_vm14, %vm1055_vm13 }
  0x80   :  { %3419 = vmatmul.mubr.msk.f32.gmra.mrb[10].mxu0 %vm75_vm3, %v3403_v28  ;;  %v5057_v28 = vsel %vm933_vm8, 1.0, %v4640_v7 }
 0x13f   :  { %v739_v35 = vpop.f32.mrb[0].mxu0 }
 0x140   :  { %v741_v37 = vpop.f32.mrb[1].mxu0  ;;  %v798_v38 = vadd.f32 %v791_v34, %v739_v35  ;;  %v937_v35 = vsel %vm934_vm11, 1.0, %v4640_v7 }
 0x141   :  { %v799_v39 = vadd.f32 %v795_v36, %v741_v37 }
 0x142   :  { %v810_v44 = vmax.f32 %v798_v38, 0.0  ;;  %v5093_v38 = vadd.s32 48, %v5012_v30 }
 0x143   :  { %v745_v40 = vpop.f32.mrb[2].mxu0  ;;  %v811_v46 = vmax.f32 %v799_v39, 0.0  ;;  %v5096_v39 = vadd.s32 56, %v5012_v30 }
 0x144   :  { %v800_v41 = vadd.f32 %v791_v34, %v745_v40  ;;  %v747_v42 = vpop.f32.mrb[3].mxu0  ;;  %v938_v40 = vsel %vm935_vm15, 1.0, %v4640_v7  ;;  %vm1059_vm6 = vcmp.eq.s32.totalorder %v5093_v38, %v5041_v24 }
 0x145   :  { %v801_v43 = vadd.f32 %v795_v36, %v747_v42  ;;  %vm1060_vm7 = vcmp.eq.s32.totalorder %v5096_v39, %v5041_v24  ;;  %v5114_v42 = vadd.s32 64, %v5012_v30 }
 0x146   :  { %v812_v45 = vmax.f32 %v800_v41, 0.0  ;;  %vm5124_vm8 = vmpackc.low %vm1060_vm7, %vm1059_vm6 }
 0x147   :  { %v813_v47 = vmax.f32 %v801_v43, 0.0  ;;  %v751_v48 = vpop.f32.mrb[4].mxu0  ;;  %v5117_v43 = vadd.s32 72, %v5012_v30  ;;  %vm1061_vm9 = vcmp.eq.s32.totalorder %v5114_v42, %v5041_v24 }
 0x148   :  { %v753_v49 = vpop.f32.mrb[5].mxu0  ;;  %v4240_v50 = vpack.c.bf16 %v812_v45, %v810_v44  ;;  %v802_v52 = vadd.f32 %v791_v34, %v751_v48  ;;  %v5850_v45 = vmov 0  ;;  %v5852_v48 = vmov 0  ;;  %v3570_v44 = vld [vmem:[%s5826_s7 + $0x40] sm:$0xff] }
 0x149   :  { %v4238_v51 = vpack.c.bf16 %v813_v47, %v811_v46  ;;  %v803_v53 = vadd.f32 %v795_v36, %v753_v49  ;;  %vm1062_vm10 = vcmp.eq.s32.totalorder %v5117_v43, %v5041_v24  ;;  %v1044_v46 = vadd.s32 80, %v5012_v30 }
 0x14a   :  { %v814_v58 = vmax.f32 %v802_v52, 0.0  ;;  %v1045_v47 = vadd.s32 88, %v5012_v30  ;;  %v1046_v49 = vadd.s32 96, %v5012_v30  ;;  %v1048_v52 = vadd.s32 112, %v5012_v30 }
 0x14b   :  { %v757_v54 = vpop.f32.mrb[6].mxu0  ;;  %4239 = vmatprep.subr.bf16.mxu1 %v4238_v51  ;;  %v815_v60 = vmax.f32 %v803_v53, 0.0  ;;  %vm1063_vm11 = vcmp.eq.s32.totalorder %v1044_v46, %v5041_v24  ;;  %v1049_v53 = vadd.s32 120, %v5012_v30 }
 0x14c   :  { %v804_v55 = vadd.f32 %v791_v34, %v757_v54  ;;  %v759_v56 = vpop.f32.mrb[7].mxu0  ;;  %4241 = vmatpush1.bf16.msra.mxu1 %v4240_v50  ;;  %vm1064_vm13 = vcmp.eq.s32.totalorder %v1045_v47, %v5041_v24  ;;  %vm1065_vm15 = vcmp.eq.s32.totalorder %v1046_v49, %v5041_v24  ;;  %vm1067_vm6 = vcmp.eq.s32.totalorder %v1048_v52, %v5041_v24 }
 0x14d   :  { %v805_v57 = vadd.f32 %v795_v36, %v759_v56  ;;  %vm5148_vm14 = vmpackc.low %vm1064_vm13, %vm1063_vm11  ;;  %vm1068_vm7 = vcmp.eq.s32.totalorder %v1049_v53, %v5041_v24  ;;  %v5856_v54 = vmov 0  ;;  %v1051_v56 = vadd.s32 136, %v5012_v30 }
 0x14e   :  { %v816_v59 = vmax.f32 %v804_v55, 0.0  ;;  %v5853_v48 = vsel %vm5148_vm14, 4294967295, %v5852_v48  ;;  %v1050_v55 = vadd.s32 128, %v5012_v30 }
 0x14f   :  { %v817_v61 = vmax.f32 %v805_v57, 0.0  ;;  %v763_v62 = vpop.f32.mrb[8].mxu0  ;;  %vm1070_vm11 = vcmp.eq.s32.totalorder %v1051_v56, %v5041_v24  ;;  %v1179_v57 = vadd.s32 1, %v5041_v24 }
 0x150   :  { %v4244_v63 = vpack.c.bf16 %v816_v59, %v814_v58  ;;  %v765_v0 = vpop.f32.mrb[9].mxu0  ;;  %v806_v2 = vadd.f32 %v791_v34, %v763_v62  ;;  %v3574_v58 = vld [vmem:[%s5826_s7 + $0x60] sm:$0xff]  ;;  %v3575_v59 = vld [vmem:[%s5826_s7 + $0x68] sm:$0xff] }
 0x151   :  { %v4242_v1 = vpack.c.bf16 %v817_v61, %v815_v60  ;;  %v807_v3 = vadd.f32 %v795_v36, %v765_v0  ;;  %v4477_v60 = vpack.c.bf16 %v3575_v59, %v3574_v58  ;;  %v3118_v59 = vld [vmem:[%s5828_s9 + $0x10] sm:$0xff] }
 0x152   :  { %v818_v13 = vmax.f32 %v806_v2, 0.0 }
 0x153   :  { %v769_v4 = vpop.f32.mrb[10].mxu0  ;;  %4243 = vmatprep.subr.bf16.mxu1 %v4242_v1  ;;  %v819_v15 = vmax.f32 %v807_v3, 0.0 }
 0x154   :  { %v808_v5 = vadd.f32 %v791_v34, %v769_v4  ;;  %v771_v6 = vpop.f32.mrb[11].mxu0  ;;  %4245 = vmatpush1.bf16.msra.mxu1 %v4244_v63  ;;  %v5073_v34 = vadd.s32 40, %v5012_v30 }
 0x155   :  { %v809_v8 = vadd.f32 %v795_v36, %v771_v6  ;;  %v4643_v36 = vmov 1.0|1.0  }
 0x156   :  { %v820_v14 = vmax.f32 %v808_v5, 0.0  ;;  %vm1058_vm3 = vcmp.eq.s32.totalorder %v5073_v34, %v5041_v24 }
 0x157   :  { %v821_v16 = vmax.f32 %v809_v8, 0.0  ;;  %vm5105_vm4 = vmpackc.low %vm1058_vm3, %vm1057_vm2 }
 0x158   :  { %v4248_v17 = vpack.c.bf16 %v820_v14, %v818_v13 }
 0x159   :  { %v4246_v18 = vpack.c.bf16 %v821_v16, %v819_v15 }
 0x15b   :  { %4247 = vmatprep.subr.bf16.mxu1 %v4246_v18 }
 0x15c   :  { %4249 = vmatpush1.bf16.msra.mxu1 %v4248_v17 }
 0x15d   :  { %4251 = vmatprep.subr.bf16.mxu1 %v4238_v51  ;;  %v5854_v51 = vmov 0 }
 0x15f   :  { %3420 = vmatmul.mubr.msk.f32.vlgmr.msra.gmra.mrb[0].mxu1 %vm837_vm5, %v5031_v21 }
 0x160   :  { %4253 = vmatpush1.bf16.msra.mxu1 %v4240_v50  ;;  %917 = vmatprep.mubr.f32.mxu1 %v4640_v7  ;;  %v1047_v50 = vadd.s32 104, %v5012_v30 }
 0x161   :  { %4255 = vmatprep.subr.bf16.mxu1 %v4242_v1 }
 0x162   :  { %vm1066_vm2 = vcmp.eq.s32.totalorder %v1047_v50, %v5041_v24  ;;  %vm1193_vm0 = vcmp.eq.s32.totalorder %v1047_v50, %v1179_v57 }
 0x163   :  { %3421 = vmatmul.mubr.msk.f32.gmra.mrb[2].mxu1 %vm837_vm5, %v835_v10  ;;  %vm5160_vm3 = vmpackc.low %vm1066_vm2, %vm1065_vm15  ;;  %vm1190_vm15 = vcmp.eq.s32.totalorder %v1044_v46, %v1179_v57  ;;  %vm1191_vm2 = vcmp.eq.s32.totalorder %v1045_v47, %v1179_v57  ;;  %v1299_v10 = vld [vmem:[%s5824_s5] sm:$0xff] }
 0x164   :  { %4257 = vmatpush1.bf16.msra.mxu1 %v4244_v63  ;;  %923 = vmatprep.mubr.f32.mxu1 %v4640_v7  ;;  %v5855_v51 = vsel %vm5160_vm3, 4294967295, %v5854_v51 }
 0x165   :  { %4259 = vmatprep.subr.bf16.mxu1 %v4246_v18 }
 0x167   :  { %3422 = vmatmul.mubr.msk.f32.gmra.mrb[4].mxu1 %vm837_vm5, %v836_v25  ;;  %v3476_v25 = vld [vmem:[%s5822_s3 + $0x58] sm:$0xff] }
 0x168   :  { %4261 = vmatpush1.bf16.msra.mxu1 %v4248_v17  ;;  %1012 = vmatprep.mubr.f32.mxu1 %v4640_v7 }
 0x169   :  { %4262 = vmatprep.subr.bf16.mxu1 %v4642_v31 }
 0x16b   :  { %3423 = vmatmul.mubr.msk.f32.vlgmr.msra.gmra.mrb[6].mxu1 %vm837_vm5, %v5057_v28 }
 0x16c   :  { %1018 = vmatprep.mubr.f32.mxu1 %v4640_v7  ;;  %4264 = vmatpush1.bf16.msk.msra.mxu1 %vm5061_vm12, %v4643_v36 }
 0x16d   :  { %4265 = vmatprep.subr.bf16.mxu1 %v4642_v31 }
 0x16f   :  { %3424 = vmatmul.mubr.msk.f32.gmra.mrb[8].mxu1 %vm837_vm5, %v937_v35 }
 0x170   :  { %1024 = vmatprep.mubr.f32.mxu1 %v4640_v7  ;;  %4267 = vmatpush1.bf16.msk.msra.mxu1 %vm5084_vm1, %v4643_v36 }
 0x171   :  { %4268 = vmatprep.subr.bf16.mxu1 %v4642_v31 }
 0x173   :  { %3425 = vmatmul.mubr.msk.f32.gmra.mrb[10].mxu1 %vm837_vm5, %v938_v40  ;;  %vm5136_vm5 = vmpackc.low %vm1062_vm10, %vm1061_vm9  ;;  %vm1069_vm10 = vcmp.eq.s32.totalorder %v1050_v55, %v5041_v24  ;;  %v3475_v24 = vld [vmem:[%s5822_s3 + $0x50] sm:$0xff] }
 0x174   :  { %4270 = vmatpush1.bf16.msk.msra.mxu1 %vm5105_vm4, %v4643_v36  ;;  %v5851_v45 = vsel %vm5136_vm5, 4294967295, %v5850_v45  ;;  %vm5172_vm9 = vmpackc.low %vm1068_vm7, %vm1067_vm6  ;;  %vm1192_vm7 = vcmp.eq.s32.totalorder %v1046_v49, %v1179_v57  ;;  %v4324_v26 = vpack.c.bf16 %v3475_v24, %v3474_v23  ;;  %v1385_v23 = vld [vmem:[%s5822_s3 + $0x10] sm:$0xff]  ;;  %v1386_v24 = vld [vmem:[%s5822_s3 + $0x18] sm:$0xff] }
 0x175   :  { %4271 = vmatprep.subr.bf16.mxu1 %v4642_v31  ;;  %v5857_v54 = vsel %vm5172_vm9, 4294967295, %v5856_v54  ;;  %vm4287_vm13 = vmpackc.low %vm1070_vm11, %vm1069_vm10  ;;  %vm1195_vm10 = vcmp.eq.s32.totalorder %v1049_v53, %v1179_v57 }
 0x176   :  { %vm5187_vm6 = vmpackc.low %vm1191_vm2, %vm1190_vm15  ;;  %vm1089_vm15 = vcmask 130048   ;;  %4325 = vmatprep.subr.bf16.mxu0 %v4324_v26 }
 0x177   :  { %4327 = vmatpush3.bf16.msra.mxu0 %v4324_v26 }
 0x178   :  { %4273 = vmatpush1.bf16.msk.msra.mxu1 %vm5124_vm8, %v4643_v36 }
 0x179   :  { %4274 = vmatprep.subr.bf16.mxu1 %v4642_v31 }
 0x17c   :  { %4276 = vmatpush1.bf16.msk.msra.mxu1 %vm5136_vm5, %v4643_v36 }
 0x17d   :  { %4277 = vmatprep.subr.bf16.mxu1 %v4642_v31 }
 0x180   :  { %4279 = vmatpush1.bf16.msk.msra.mxu1 %vm5148_vm14, %v4643_v36  ;;  %vm1197_vm14 = vcmp.eq.s32.totalorder %v1051_v56, %v1179_v57 }
 0x181   :  { %4280 = vmatprep.subr.bf16.mxu1 %v4642_v31 }
 0x184   :  { %4282 = vmatpush1.bf16.msk.msra.mxu1 %vm5160_vm3, %v4643_v36  ;;  %vm1194_vm3 = vcmp.eq.s32.totalorder %v1048_v52, %v1179_v57 }
 0x185   :  { %4283 = vmatprep.subr.bf16.mxu1 %v4642_v31  ;;  %vm5195_vm11 = vmpackc.low %vm1195_vm10, %vm1194_vm3  ;;  %vm1181_vm3 = vcmp.eq.s32.totalorder %v5023_v12, %v1179_v57  ;;  %v5868_v12 = vmov 0 }
 0x188   :  { %4285 = vmatpush1.bf16.msk.msra.mxu1 %vm5172_vm9, %v4643_v36  ;;  %vm5191_vm9 = vmpackc.low %vm1193_vm0, %vm1192_vm7  ;;  %vm1180_vm0 = vcmp.eq.s32.totalorder %v5012_v30, %v1179_v57  ;;  %vm1183_vm7 = vcmp.eq.s32.totalorder %v5052_v27, %v1179_v57  ;;  %v3477_v27 = vld [vmem:[%s5822_s3 + $0x60] sm:$0xff] }
 0x189   :  { %4286 = vmatprep.subr.bf16.mxu1 %v4642_v31  ;;  %vm5205_vm2 = vmpackc.low %vm1181_vm3, %vm1180_vm0  ;;  %vm1185_vm0 = vcmp.eq.s32.totalorder %v5073_v34, %v1179_v57  ;;  %v4328_v29 = vpack.c.bf16 %v3477_v27, %v3476_v25  ;;  %v3479_v34 = vld [vmem:[%s5822_s3 + $0x70] sm:$0xff]  ;;  %v4344_v27 = vpack.c.bf16 %v1386_v24, %v1385_v23  ;;  %v3514_v23 = vld [vmem:[%s5822_s3 + $0x118] sm:$0xff] }
 0x18a   :  { %v5867_v9 = vsel %vm5205_vm2, 4294967295, %v5866_v9  ;;  %v3521_v24 = vld [vmem:[%s5822_s3 + $0x120] sm:$0xff] }
 0x18b   :  { %4329 = vmatprep.subr.bf16.mxu0 %v4328_v29 }
 0x18c   :  { %4288 = vmatpush1.bf16.msk.msra.mxu1 %vm4287_vm13, %v4643_v36  ;;  %vm1196_vm13 = vcmp.eq.s32.totalorder %v1050_v55, %v1179_v57  ;;  %4331 = vmatpush3.bf16.msra.mxu0 %v4328_v29  ;;  %v1387_v29 = vld [vmem:[%s5822_s3 + $0x20] sm:$0xff] }
 0x18d   :  { %4289 = vmatprep.subr.bf16.mxu1 %v4642_v31  ;;  %vm5199_vm5 = vmpackc.low %vm1197_vm14, %vm1196_vm13  ;;  %vm1182_vm14 = vcmp.eq.s32.totalorder %v5028_v20, %v1179_v57  ;;  %vm1184_vm13 = vcmp.eq.s32.totalorder %v5070_v33, %v1179_v57  ;;  %v3478_v33 = vld [vmem:[%s5822_s3 + $0x68] sm:$0xff] }
 0x18e   :  { %vm5216_vm10 = vmpackc.low %vm1183_vm7, %vm1182_vm14  ;;  %vm1186_vm14 = vcmp.eq.s32.totalorder %v5093_v38, %v1179_v57  ;;  %vm1187_vm7 = vcmp.eq.s32.totalorder %v5096_v39, %v1179_v57  ;;  %v4332_v35 = vpack.c.bf16 %v3479_v34, %v3478_v33  ;;  %v3480_v38 = vld [vmem:[%s5822_s3 + $0x78] sm:$0xff]  ;;  %v3481_v39 = vld [vmem:[%s5822_s3 + $0x80] sm:$0xff] }
 0x18f   :  { %v5869_v12 = vsel %vm5216_vm10, 4294967295, %v5868_v12  ;;  %vm5227_vm3 = vmpackc.low %vm1185_vm0, %vm1184_vm13  ;;  %vm1188_vm13 = vcmp.eq.s32.totalorder %v5114_v42, %v1179_v57  ;;  %vm1189_vm0 = vcmp.eq.s32.totalorder %v5117_v43, %v1179_v57  ;;  %v4336_v40 = vpack.c.bf16 %v3481_v39, %v3480_v38  ;;  %v1388_v33 = vld [vmem:[%s5822_s3 + $0x28] sm:$0xff]  ;;  %v1390_v38 = vld [vmem:[%s5822_s3 + $0x38] sm:$0xff] }
 0x190   :  { %4333 = vmatprep.subr.bf16.mxu0 %v4332_v35  ;;  %v4348_v34 = vpack.c.bf16 %v1388_v33, %v1387_v29 }
 0x191   :  { %4335 = vmatpush3.bf16.msra.mxu0 %v4332_v35  ;;  %v1389_v35 = vld [vmem:[%s5822_s3 + $0x30] sm:$0xff] }
 0x192   :  { %4337 = vmatprep.subr.bf16.mxu0 %v4336_v40 }
 0x195   :  { %4339 = vmatpush3.bf16.msra.mxu0 %v4336_v40 }
 0x232   :  { %v913_v62 = vpop.f32.mrb[0].mxu1 }
 0x233   :  { %v915_v63 = vpop.f32.mrb[1].mxu1 }
 0x236   :  { %v919_v0 = vpop.f32.mrb[2].mxu1 }
 0x237   :  { %v921_v1 = vpop.f32.mrb[3].mxu1 }
 0x23a   :  { %v925_v2 = vpop.f32.mrb[4].mxu1 }
 0x23b   :  { %v927_v3 = vpop.f32.mrb[5].mxu1 }
 0x23e   :  { %v1014_v4 = vpop.f32.mrb[6].mxu1 }
 0x23f   :  { %v1031_v5 = vmax.f32 %v913_v62, %v1014_v4  ;;  %v1016_v6 = vpop.f32.mrb[7].mxu1  ;;  %v3471_v4 = vld [vmem:[%s5824_s5 + $0x18] sm:$0xff] }
 0x240   :  { %v1032_v8 = vmax.f32 %v915_v63, %v1016_v6  ;;  %v3488_v6 = vld [vmem:[%s5824_s5 + $0x28] sm:$0xff] }
 0x242   :  { %v1020_v11 = vpop.f32.mrb[8].mxu1  ;;  %3444 = vmatprep.mubr.msk.f32.mxu1 %vm1089_vm15, %v1032_v8 }
 0x243   :  { %v1033_v13 = vmax.f32 %v919_v0, %v1020_v11  ;;  %v1022_v14 = vpop.f32.mrb[9].mxu1  ;;  %1164 = vmatmul.mubr.f32.vlgmr.msra.gmra.mrb[12].mxu1 %v1031_v5  ;;  %v3503_v11 = vld [vmem:[%s5824_s5 + $0x38] sm:$0xff] }
 0x244   :  { %v1034_v30 = vmax.f32 %v921_v1, %v1022_v14  ;;  %4291 = vmatpush1.bf16.msk.msra.mxu1 %vm5205_vm2, %v4643_v36  ;;  %vm5249_vm2 = vmpackc.low %vm1189_vm0, %vm1188_vm13  ;;  %v3518_v14 = vld [vmem:[%s5824_s5 + $0x48] sm:$0xff]  ;;  %vm5881_vm13 = vnez %v5869_v12  ;;  %v3577_v12 = vld [vmem:[%s5826_s7 + $0x78] sm:$0xff] }
 0x245   :  { %4292 = vmatprep.subr.bf16.mxu1 %v4642_v31 }
 0x246   :  { %v1026_v15 = vpop.f32.mrb[10].mxu1  ;;  %3445 = vmatprep.mubr.msk.f32.mxu1 %vm1089_vm15, %v1034_v30 }
 0x247   :  { %v1035_v16 = vmax.f32 %v925_v2, %v1026_v15  ;;  %v1028_v17 = vpop.f32.mrb[11].mxu1  ;;  %1169 = vmatmul.mubr.f32.gmra.mrb[14].mxu1 %v1033_v13  ;;  %v1300_v2 = vld [vmem:[%s5824_s5 + $0x8] sm:$0xff]  ;;  %v1383_v15 = vld [vmem:[%s5822_s3] sm:$0xff] }
 0x248   :  { %v1036_v18 = vmax.f32 %v927_v3, %v1028_v17  ;;  %4294 = vmatpush1.bf16.msk.msra.mxu1 %vm5216_vm10, %v4643_v36  ;;  %vm5239_vm10 = vmpackc.low %vm1187_vm7, %vm1186_vm14  ;;  %vm1301_vm14 = vcmask 195584   ;;  %v3470_v3 = vld [vmem:[%s5824_s5 + $0x10] sm:$0xff]  ;;  %vm4644_vm7 = vmmov 0  }
 0x249   :  { %4295 = vmatprep.subr.bf16.mxu1 %v4642_v31 }
 0x24a   :  { %3446 = vmatprep.mubr.msk.f32.mxu1 %vm1089_vm15, %v1036_v18 }
 0x24b   :  { %1174 = vmatmul.mubr.f32.gmra.mrb[16].mxu1 %v1035_v16 }
 0x24c   :  { %4297 = vmatpush1.bf16.msk.msra.mxu1 %vm5227_vm3, %v4643_v36  ;;  %3465 = vmatprep.mubr.msk.f32.mxu1 %vm1089_vm15, %v1032_v8  ;;  %v3502_v8 = vld [vmem:[%s5824_s5 + $0x30] sm:$0xff] }
 0x24d   :  { %4298 = vmatprep.subr.bf16.mxu1 %v4642_v31 }
 0x250   :  { %4300 = vmatpush1.bf16.msk.msra.mxu1 %vm5239_vm10, %v4643_v36 }
 0x251   :  { %4301 = vmatprep.subr.bf16.mxu1 %v4642_v31 }
 0x254   :  { %4303 = vmatpush1.bf16.msk.msra.mxu1 %vm5249_vm2, %v4643_v36 }
 0x255   :  { %4304 = vmatprep.subr.bf16.mxu1 %v4642_v31 }
 0x258   :  { %4306 = vmatpush1.bf16.msk.msra.mxu1 %vm5187_vm6, %v4643_v36 }
 0x259   :  { %4307 = vmatprep.subr.bf16.mxu1 %v4642_v31 }
 0x25c   :  { %4309 = vmatpush1.bf16.msk.msra.mxu1 %vm5191_vm9, %v4643_v36 }
 0x25d   :  { %4310 = vmatprep.subr.bf16.mxu1 %v4642_v31 }
 0x260   :  { %4312 = vmatpush1.bf16.msk.msra.mxu1 %vm5195_vm11, %v4643_v36 }
 0x261   :  { %4313 = vmatprep.subr.bf16.mxu1 %v4642_v31 }
 0x264   :  { %4315 = vmatpush1.bf16.msk.msra.mxu1 %vm5199_vm5, %v4643_v36  ;;  %vm1486_vm5 = vcmask 588800  }
 0x267   :  { %1281 = vmatmul.mubr.f32.vlgmr.msra.gmra.mrb[18].mxu1 %v1031_v5  ;;  %v3487_v5 = vld [vmem:[%s5824_s5 + $0x20] sm:$0xff] }
 0x268   :  { %3466 = vmatprep.mubr.msk.f32.mxu1 %vm1089_vm15, %v1034_v30  ;;  %v3482_v30 = vld [vmem:[%s5822_s3 + $0x88] sm:$0xff] }
 0x269   :  { %3834 = vmatprep.subr.mxu0 %v3482_v30 }
 0x26a   :  { %3835 = vmatpush3.msra.mxu0 %v3482_v30  ;;  %v3510_v30 = vld [vmem:[%s5822_s3 + $0xf8] sm:$0xff] }
 0x26b   :  { %1286 = vmatmul.mubr.f32.gmra.mrb[20].mxu1 %v1033_v13  ;;  %v3517_v13 = vld [vmem:[%s5824_s5 + $0x40] sm:$0xff] }
 0x26c   :  { %3467 = vmatprep.mubr.msk.f32.mxu1 %vm1089_vm15, %v1036_v18 }
 0x26f   :  { %1291 = vmatmul.mubr.f32.gmra.mrb[22].mxu1 %v1035_v16  ;;  %v1384_v16 = vld [vmem:[%s5822_s3 + $0x8] sm:$0xff] }
 0x270   :  { %3806 = vmatprep.mubr.msk.f32.mxu1 %vm1301_vm14, %v1299_v10  ;;  %v4340_v17 = vpack.c.bf16 %v1384_v16, %v1383_v15  ;;  %v3511_v15 = vld [vmem:[%s5822_s3 + $0x100] sm:$0xff] }
 0x271   :  { %v4388_v16 = vpack.c.bf16 %v3511_v15, %v3510_v30  ;;  %v2559_v30 = vld [vmem:[%s5826_s7 + $0x38] sm:$0xff] }
 0x272   :  { %4341 = vmatprep.subr.bf16.mxu0 %v4340_v17 }
 0x316   :  { %v1165_v42 = vpop.f32.mrb[12].mxu1 }
 0x317   :  { %v1167_v43 = vpop.f32.mrb[13].mxu1 }
 0x31a   :  { %v1170_v46 = vpop.f32.mrb[14].mxu1 }
 0x31b   :  { %v1172_v47 = vpop.f32.mrb[15].mxu1 }
 0x31c   :  { %v1391_v47 = vld [vmem:[%s5822_s3 + $0x40] sm:$0xff] }
 0x31e   :  { %v1175_v49 = vpop.f32.mrb[16].mxu1 }
 0x31f   :  { %v1177_v50 = vpop.f32.mrb[17].mxu1 }
 0x320   :  { %v3492_v50 = vld [vmem:[%s5822_s3 + $0x98] sm:$0xff] }
 0x33a   :  { %v1282_v52 = vpop.f32.mrb[18].mxu1 }
 0x33b   :  { %v1296_v53 = vmax.f32 %v1165_v42, %v1282_v52  ;;  %v1284_v55 = vpop.f32.mrb[19].mxu1  ;;  %v4352_v42 = vpack.c.bf16 %v1390_v38, %v1389_v35  ;;  %v3493_v52 = vld [vmem:[%s5822_s3 + $0xa0] sm:$0xff]  ;;  %v3526_v35 = vld [vmem:[%s5822_s3 + $0x148] sm:$0xff] }
 0x33e   :  { %v1287_v56 = vpop.f32.mrb[20].mxu1 }
 0x33f   :  { %v1297_v57 = vmax.f32 %v1170_v46, %v1287_v56  ;;  %v1289_v61 = vpop.f32.mrb[21].mxu1 }
 0x341   :  { %v4316_v62 = vpack.c.bf16 %v1297_v57, %v1296_v53  ;;  %v3494_v53 = vld [vmem:[%s5822_s3 + $0xa8] sm:$0xff] }
 0x342   :  { %v1292_v63 = vpop.f32.mrb[22].mxu1  ;;  %v4364_v57 = vpack.c.bf16 %v3494_v53, %v3493_v52 }
 0x343   :  { %v1298_v0 = vmax.f32 %v1175_v49, %v1292_v63  ;;  %v1294_v1 = vpop.f32.mrb[23].mxu1  ;;  %4317 = vmatprep.subr.bf16.mxu1 %v4316_v62  ;;  %v3491_v49 = vld [vmem:[%s5822_s3 + $0x90] sm:$0xff]  ;;  %v3496_v63 = vld [vmem:[%s5822_s3 + $0xb8] sm:$0xff] }
 0x344   :  { %4319 = vmatpush3.bf16.msra.mxu1 %v4316_v62  ;;  %v4360_v55 = vpack.c.bf16 %v3492_v50, %v3491_v49  ;;  %v3497_v1 = vld [vmem:[%s5822_s3 + $0xc0] sm:$0xff] }
 0x345   :  { %3804 = vmatprep.subr.mxu1 %v1298_v0 }
 0x348   :  { %3805 = vmatpush3.msra.mxu1 %v1298_v0 }
 0x349   :  { %4321 = vmatprep.subr.bf16.mxu1 %v4316_v62  ;;  %3807 = vmatmul.mubr.msk.f32.vlgmr.msra.gmra.mrb[24].mxu1 %vm1301_vm14, %v1300_v2  ;;  %v3498_v2 = vld [vmem:[%s5822_s3 + $0xc8] sm:$0xff] }
 0x34a   :  { %4323 = vmatpush3.bf16.msra.mxu1 %v4316_v62  ;;  %3815 = vmatprep.mubr.msk.f32.mxu1 %vm1301_vm14, %v3470_v3  ;;  %v4372_v3 = vpack.c.bf16 %v3498_v2, %v3497_v1  ;;  %v2553_v1 = vld [vmem:[%s5826_s7 + $0x8] sm:$0xff]  ;;  %v3568_v2 = vld [vmem:[%s5825_s6 + $0x2] sm:$0x3] }
 0x34b   :  { %3813 = vmatprep.subr.mxu1 %v1298_v0 }
 0x34e   :  { %3814 = vmatpush3.msra.mxu1 %v1298_v0 }
 0x34f   :  { %3816 = vmatmul.mubr.msk.f32.vlgmr.msra.gmra.mrb[26].mxu1 %vm1301_vm14, %v3471_v4  ;;  %4357 = vmatprep.subr.bf16.mxu1 %v4316_v62  ;;  %v3499_v4 = vld [vmem:[%s5822_s3 + $0xd0] sm:$0xff] }
 0x350   :  { %4359 = vmatpush3.bf16.msra.mxu1 %v4316_v62  ;;  %3866 = vmatprep.mubr.msk.f32.mxu1 %vm1301_vm14, %v3487_v5  ;;  %v3506_v5 = vld [vmem:[%s5822_s3 + $0xd8] sm:$0xff] }
 0x351   :  { %3864 = vmatprep.subr.mxu1 %v1298_v0 }
 0x354   :  { %3865 = vmatpush3.msra.mxu1 %v1298_v0 }
 0x355   :  { %4377 = vmatprep.subr.bf16.mxu1 %v4316_v62  ;;  %3867 = vmatmul.mubr.msk.f32.vlgmr.msra.gmra.mrb[28].mxu1 %vm1301_vm14, %v3488_v6  ;;  %v3507_v6 = vld [vmem:[%s5822_s3 + $0xe0] sm:$0xff] }
 0x356   :  { %4379 = vmatpush3.bf16.msra.mxu1 %v4316_v62  ;;  %3896 = vmatprep.mubr.msk.f32.mxu1 %vm1301_vm14, %v3502_v8  ;;  %v3508_v8 = vld [vmem:[%s5822_s3 + $0xe8] sm:$0xff] }
 0x357   :  { %3894 = vmatprep.subr.mxu1 %v1298_v0 }
 0x35a   :  { %3895 = vmatpush3.msra.mxu1 %v1298_v0 }
 0x35b   :  { %4397 = vmatprep.subr.bf16.mxu1 %v4316_v62  ;;  %3897 = vmatmul.mubr.msk.f32.vlgmr.msra.gmra.mrb[30].mxu1 %vm1301_vm14, %v3503_v11  ;;  %v3509_v11 = vld [vmem:[%s5822_s3 + $0xf0] sm:$0xff] }
 0x35c   :  { %4399 = vmatpush3.bf16.msra.mxu1 %v4316_v62  ;;  %3926 = vmatprep.mubr.msk.f32.mxu1 %vm1301_vm14, %v3517_v13  ;;  %v3495_v62 = vld [vmem:[%s5822_s3 + $0xb0] sm:$0xff]  ;;  %v4380_v13 = vpack.c.bf16 %v3507_v6, %v3506_v5  ;;  %v2555_v5 = vld [vmem:[%s5826_s7 + $0x18] sm:$0xff] }
 0x35d   :  { %3924 = vmatprep.subr.mxu1 %v1298_v0 }
 0x360   :  { %3925 = vmatpush3.msra.mxu1 %v1298_v0  ;;  %v4368_v0 = vpack.c.bf16 %v3496_v63, %v3495_v62  ;;  %v2477_v63 = vld [vmem:[%s5825_s6] sm:$0x3] }
 0x361   :  { %3927 = vmatmul.mubr.msk.f32.vlgmr.msra.gmra.mrb[32].mxu1 %vm1301_vm14, %v3518_v14  ;;  %4416 = vmatprep.subr.bf16.mxu1 %v4642_v31  ;;  %v4384_v14 = vpack.c.bf16 %v3509_v11, %v3508_v8  ;;  %v2556_v8 = vld [vmem:[%s5826_s7 + $0x20] sm:$0xff]  ;;  %v2557_v11 = vld [vmem:[%s5826_s7 + $0x28] sm:$0xff] }
 0x362   :  { %3954 = vmatprep.mubr.msk.f32.mxu1 %vm4644_vm7, %v4640_v7 }
 0x41c   :  { %v3808_v18 = vpop.f32.mrb[24].mxu1 }
 0x41d   :  { %v1374_v10 = vpop.f32.mrb[25].mxu1 }
 0x422   :  { %v3817_v25 = vpop.f32.mrb[26].mxu1 }
 0x423   :  { %v1467_v26 = vpop.f32.mrb[27].mxu1 }
 0x424   :  { %3836 = vmatprep.mubr.msk.f32.mxu0 %vm1486_vm5, %v1467_v26  ;;  %v3523_v26 = vld [vmem:[%s5822_s3 + $0x130] sm:$0xff] }
 0x425   :  { %3837 = vmatmul.mubr.msk.f32.vlgmr.msra.gmra.mrb[12].mxu0 %vm1486_vm5, %v3817_v25  ;;  %v3522_v25 = vld [vmem:[%s5822_s3 + $0x128] sm:$0xff] }
 0x426   :  { %4343 = vmatpush3.bf16.msra.mxu0 %v4340_v17  ;;  %3857 = vmatprep.mubr.msk.f32.mxu0 %vm1486_vm5, %v1374_v10  ;;  %v3512_v17 = vld [vmem:[%s5822_s3 + $0x108] sm:$0xff]  ;;  %v4400_v29 = vpack.c.bf16 %v3522_v25, %v3521_v24  ;;  %v3585_v24 = vld [vmem:[%s5826_s7 + $0x98] sm:$0xff] }
 0x427   :  { %4345 = vmatprep.subr.bf16.mxu0 %v4344_v27 }
 0x428   :  { %v3868_v39 = vpop.f32.mrb[28].mxu1 }
 0x429   :  { %v1724_v40 = vpop.f32.mrb[29].mxu1 }
 0x42a   :  { %4347 = vmatpush3.bf16.msra.mxu0 %v4344_v27  ;;  %v3524_v27 = vld [vmem:[%s5822_s3 + $0x138] sm:$0xff] }
 0x42b   :  { %4349 = vmatprep.subr.bf16.mxu0 %v4348_v34  ;;  %v4404_v33 = vpack.c.bf16 %v3524_v27, %v3523_v26 }
 0x42e   :  { %4351 = vmatpush3.bf16.msra.mxu0 %v4348_v34  ;;  %v5369_v43 = vpop.f32.mrb[30].mxu1  ;;  %v3525_v34 = vld [vmem:[%s5822_s3 + $0x140] sm:$0xff] }
 0x42f   :  { %4353 = vmatprep.subr.bf16.mxu0 %v4352_v42  ;;  %v1901_v46 = vpop.f32.mrb[31].mxu1  ;;  %v4408_v38 = vpack.c.bf16 %v3526_v35, %v3525_v34  ;;  %v3580_v35 = vld [vmem:[%s5825_s6 + $0x4] sm:$0x3] }
 0x432   :  { %4355 = vmatpush3.bf16.msra.mxu0 %v4352_v42 }
 0x433   :  { %3855 = vmatprep.subr.mxu0 %v1391_v47 }
 0x434   :  { %v5386_v56 = vpop.f32.mrb[32].mxu1 }
 0x435   :  { %v2078_v61 = vpop.f32.mrb[33].mxu1 }
 0x436   :  { %3856 = vmatpush3.msra.mxu0 %v1391_v47 }
 0x437   :  { %3858 = vmatmul.mubr.msk.f32.vlgmr.msra.gmra.mrb[12].mxu0 %vm1486_vm5, %v3808_v18  ;;  %4361 = vmatprep.subr.bf16.mxu0 %v4360_v55  ;;  %v3513_v18 = vld [vmem:[%s5822_s3 + $0x110] sm:$0xff] }
 0x438   :  { %4363 = vmatpush3.bf16.msra.mxu0 %v4360_v55  ;;  %3887 = vmatprep.mubr.msk.f32.mxu0 %vm1486_vm5, %v1724_v40  ;;  %v4392_v10 = vpack.c.bf16 %v3513_v18, %v3512_v17  ;;  %v3528_v40 = vld [vmem:[%s5822_s3 + $0x158] sm:$0xff]  ;;  %v3583_v17 = vld [vmem:[%s5826_s7 + $0x88] sm:$0xff] }
 0x439   :  { %4365 = vmatprep.subr.bf16.mxu0 %v4364_v57 }
 0x43c   :  { %4367 = vmatpush3.bf16.msra.mxu0 %v4364_v57 }
 0x43d   :  { %4369 = vmatprep.subr.bf16.mxu0 %v4368_v0 }
 0x440   :  { %4371 = vmatpush3.bf16.msra.mxu0 %v4368_v0  ;;  %v2552_v0 = vld [vmem:[%s5826_s7] sm:$0xff] }
 0x441   :  { %4373 = vmatprep.subr.bf16.mxu0 %v4372_v3 }
 0x444   :  { %4375 = vmatpush3.bf16.msra.mxu0 %v4372_v3  ;;  %v4483_v3 = vpack.c.bf16 %v2553_v1, %v2552_v0  ;;  %v3123_v0 = vld [vmem:[%s5828_s9 + $0x38] sm:$0xff] }
 0x445   :  { %3885 = vmatprep.subr.mxu0 %v3499_v4 }
 0x448   :  { %3886 = vmatpush3.msra.mxu0 %v3499_v4  ;;  %v2554_v4 = vld [vmem:[%s5826_s7 + $0x10] sm:$0xff] }
 0x449   :  { %4381 = vmatprep.subr.bf16.mxu0 %v4380_v13  ;;  %3888 = vmatmul.mubr.msk.f32.vlgmr.msra.gmra.mrb[12].mxu0 %vm1486_vm5, %v3868_v39  ;;  %v3527_v39 = vld [vmem:[%s5822_s3 + $0x150] sm:$0xff]  ;;  %v4486_v6 = vpack.c.bf16 %v2555_v5, %v2554_v4 }
 0x44a   :  { %4383 = vmatpush3.bf16.msra.mxu0 %v4380_v13  ;;  %3917 = vmatprep.mubr.msk.f32.mxu0 %vm1486_vm5, %v1901_v46  ;;  %v4412_v42 = vpack.c.bf16 %v3528_v40, %v3527_v39  ;;  %v3532_v46 = vld [vmem:[%s5823_s4] ss:$0 sm:$0xff]  ;;  %v4489_v13 = vpack.c.bf16 %v2557_v11, %v2556_v8  ;;  %v3594_v39 = vld [vmem:[%s5826_s7 + $0xc8] sm:$0xff]  ;;  %v3126_v5 = vld [vmem:[%s5828_s9 + $0x50] sm:$0xff] }
 0x44b   :  { %4385 = vmatprep.subr.bf16.mxu0 %v4384_v14  ;;  %v3128_v11 = vld [vmem:[%s5828_s9 + $0x60] sm:$0xff] }
 0x44e   :  { %4387 = vmatpush3.bf16.msra.mxu0 %v4384_v14  ;;  %v2558_v14 = vld [vmem:[%s5826_s7 + $0x30] sm:$0xff] }
 0x44f   :  { %4389 = vmatprep.subr.bf16.mxu0 %v4388_v16  ;;  %v4492_v15 = vpack.c.bf16 %v2559_v30, %v2558_v14  ;;  %v3130_v30 = vld [vmem:[%s5828_s9 + $0x70] sm:$0xff] }
 0x452   :  { %4391 = vmatpush3.bf16.msra.mxu0 %v4388_v16  ;;  %v3582_v16 = vld [vmem:[%s5826_s7 + $0x80] sm:$0xff] }
 0x453   :  { %4393 = vmatprep.subr.bf16.mxu0 %v4392_v10  ;;  %v4495_v18 = vpack.c.bf16 %v3583_v17, %v3582_v16  ;;  %v3214_v16 = vld [vmem:[%s5830_s11 + $0x8] sm:$0xff]  ;;  %v3215_v17 = vld [vmem:[%s5830_s11 + $0x10] sm:$0xff] }
 0x456   :  { %4395 = vmatpush3.bf16.msra.mxu0 %v4392_v10 }
 0x457   :  { %3915 = vmatprep.subr.mxu0 %v3514_v23 }
 0x45a   :  { %3916 = vmatpush3.msra.mxu0 %v3514_v23  ;;  %v3584_v23 = vld [vmem:[%s5826_s7 + $0x90] sm:$0xff] }
 0x45b   :  { %4401 = vmatprep.subr.bf16.mxu0 %v4400_v29  ;;  %3918 = vmatmul.mubr.msk.f32.vlgmr.msra.gmra.mrb[12].mxu0 %vm1486_vm5, %v5369_v43  ;;  %v3529_v43 = vld [vmem:[%s5822_s3 + $0x160] sm:$0xff]  ;;  %v4498_v26 = vpack.c.bf16 %v3585_v24, %v3584_v23 }
 0x45c   :  { %4403 = vmatpush3.bf16.msra.mxu0 %v4400_v29  ;;  %3947 = vmatprep.mubr.msk.f32.mxu0 %vm1486_vm5, %v2078_v61  ;;  %v3586_v29 = vld [vmem:[%s5826_s7 + $0xa0] sm:$0xff] }
 0x45d   :  { %4405 = vmatprep.subr.bf16.mxu0 %v4404_v33  ;;  %v3217_v24 = vld [vmem:[%s5830_s11 + $0x20] sm:$0xff] }
 0x460   :  { %4407 = vmatpush3.bf16.msra.mxu0 %v4404_v33  ;;  %v3587_v33 = vld [vmem:[%s5826_s7 + $0xa8] sm:$0xff] }
 0x461   :  { %4409 = vmatprep.subr.bf16.mxu0 %v4408_v38  ;;  %v4501_v40 = vpack.c.bf16 %v3587_v33, %v3586_v29  ;;  %v3220_v29 = vld [vmem:[%s5830_s11 + $0x38] sm:$0xff] }
 0x464   :  { %4411 = vmatpush3.bf16.msra.mxu0 %v4408_v38  ;;  %v3593_v38 = vld [vmem:[%s5826_s7 + $0xc0] sm:$0xff] }
 0x465   :  { %4413 = vmatprep.subr.bf16.mxu0 %v4412_v42 }
 0x468   :  { %4415 = vmatpush3.bf16.msra.mxu0 %v4412_v42  ;;  %v3591_v42 = vld [vmem:[%s5825_s6 + $0x6] sm:$0x3] }
 0x469   :  { %3945 = vmatprep.subr.mxu0 %v3529_v43 }
 0x46c   :  { %3946 = vmatpush3.msra.mxu0 %v3529_v43  ;;  %v4507_v43 = vpack.c.bf16 %v3594_v39, %v3593_v38 }
 0x46d   :  { %3948 = vmatmul.mubr.msk.f32.vlgmr.msra.gmra.mrb[12].mxu0 %vm1486_vm5, %v5386_v56  ;;  %4034 = vmatprep.subr.mxu0 %v4640_v7 }
 0x46e   :  { %4036 = vmatprep.mubr.msk.f32.mxu0 %vm4644_vm7, %v4640_v7 }
 0x540   :  { %v3949_v47 = vpop.f32.mrb[12].mxu0 }
 0x541   :  { %v2188_v49 = vadd.f32 %v3949_v47, %v3532_v46  ;;  %v2169_v50 = vpop.f32.mrb[13].mxu0  ;;  %v3596_v47 = vld [vmem:[%s5826_s7 + $0xd8] sm:$0xff] }
 0x542   :  { %v2187_v52 = vadd.f32 %v3532_v46, %v2169_v50  ;;  %v3595_v46 = vld [vmem:[%s5826_s7 + $0xd0] sm:$0xff] }
 0x543   :  { %v2190_v53 = vmax.f32 %v2188_v49, 0.0  ;;  %v4510_v49 = vpack.c.bf16 %v3596_v47, %v3595_v46  ;;  %v3588_v50 = vld [vmem:[%s5826_s7 + $0xb0] sm:$0xff] }
 0x544   :  { %v2189_v55 = vmax.f32 %v2187_v52, 0.0  ;;  %v3589_v52 = vld [vmem:[%s5826_s7 + $0xb8] sm:$0xff] }
 0x546   :  { %v4417_v56 = vpack.c.bf16 %v2190_v53, %v2189_v55  ;;  %v3597_v53 = vld [vmem:[%s5826_s7 + $0xe0] sm:$0xff]  ;;  %v4504_v55 = vpack.c.bf16 %v3589_v52, %v3588_v50  ;;  %v3223_v52 = vld [vmem:[%s5830_s11 + $0x50] sm:$0xf] }
 0x548   :  { %4418 = vmatpush3.bf16.msra.mxu1 %v4417_v56 }
 0x549   :  { %4419 = vmatprep.subr.bf16.mxu1 %v4642_v31 }
 0x54b   :  { %3955 = vmatmul.mubr.msk.f32.vlgmr.msra.gmra.mrb[34].mxu1 %vm1089_vm15, %v5031_v21 }
 0x54c   :  { %4421 = vmatpush3.bf16.msra.mxu1 %v4417_v56  ;;  %3961 = vmatprep.mubr.msk.f32.mxu1 %vm4644_vm7, %v4640_v7  ;;  %v3598_v56 = vld [vmem:[%s5826_s7 + $0xe8] sm:$0xff] }
 0x54d   :  { %4422 = vmatprep.subr.bf16.mxu1 %v4642_v31 }
 0x54f   :  { %3962 = vmatmul.mubr.msk.f32.vlgmr.msra.gmra.mrb[36].mxu1 %vm1089_vm15, %v5057_v28  ;;  %vm5880_vm15 = vnez %v5867_v9  ;;  %v3576_v9 = vld [vmem:[%s5826_s7 + $0x70] sm:$0xff] }
 0x550   :  { %4424 = vmatpush3.bf16.msk.msra.mxu1 %vm5061_vm12, %v4643_v36  ;;  %3996 = vmatprep.mubr.msk.f32.mxu1 %vm4644_vm7, %v4640_v7  ;;  %vm5876_vm12 = vnez %v5851_v45  ;;  %v3571_v45 = vld [vmem:[%s5826_s7 + $0x48] sm:$0xff]  ;;  %v4480_v19 = vpack.c.bf16 %v3577_v12, %v3576_v9 }
 0x551   :  { %4425 = vmatprep.subr.bf16.mxu1 %v4642_v31 }
 0x554   :  { %4427 = vmatpush3.bf16.msk.msra.mxu1 %vm5084_vm1, %v4643_v36  ;;  %vm5877_vm1 = vnez %v5853_v48  ;;  %v4471_v48 = vpack.c.bf16 %v3571_v45, %v3570_v44  ;;  %v3116_v45 = vld [vmem:[%s5828_s9] sm:$0xff] }
 0x555   :  { %4428 = vmatprep.subr.bf16.mxu1 %v4642_v31 }
 0x558   :  { %4430 = vmatpush3.bf16.msk.msra.mxu1 %vm5105_vm4, %v4643_v36  ;;  %vm5878_vm4 = vnez %v5855_v51  ;;  %v3572_v51 = vld [vmem:[%s5826_s7 + $0x50] sm:$0xff] }
 0x559   :  { %4431 = vmatprep.subr.bf16.mxu1 %v4642_v31 }
 0x55c   :  { %4433 = vmatpush3.bf16.msk.msra.mxu1 %vm5124_vm8, %v4643_v36  ;;  %vm5879_vm8 = vnez %v5857_v54 }
 0x55d   :  { %4434 = vmatprep.subr.bf16.mxu1 %v4642_v31 }
 0x560   :  { %4436 = vmatpush3.bf16.msk.msra.mxu1 %vm5876_vm12, %v4643_v36 }
 0x561   :  { %4437 = vmatprep.subr.bf16.mxu1 %v4642_v31 }
 0x564   :  { %4439 = vmatpush3.bf16.msk.msra.mxu1 %vm5877_vm1, %v4643_v36 }
 0x565   :  { %4440 = vmatprep.subr.bf16.mxu1 %v4642_v31 }
 0x568   :  { %4442 = vmatpush3.bf16.msk.msra.mxu1 %vm5878_vm4, %v4643_v36 }
 0x569   :  { %4443 = vmatprep.subr.bf16.mxu1 %v4642_v31 }
 0x56c   :  { %4445 = vmatpush3.bf16.msk.msra.mxu1 %vm5879_vm8, %v4643_v36 }
 0x56d   :  { %4446 = vmatprep.subr.bf16.mxu1 %v4642_v31 }
 0x61e   :  { %v2259_v21 = vpop.f32.mrb[34].mxu1 }
 0x61f   :  { %v3956_v28 = vpop.f32.mrb[35].mxu1 }
 0x620   :  { %v3599_v28 = vld [vmem:[%s5826_s7 + $0xf0] sm:$0xff] }
 0x622   :  { %v2331_v32 = vpop.f32.mrb[36].mxu1 }
 0x623   :  { %v2335_v37 = vmax.f32 %v2259_v21, %v2331_v32  ;;  %v3963_v41 = vpop.f32.mrb[37].mxu1  ;;  %v4513_v21 = vpack.c.bf16 %v3598_v56, %v3597_v53  ;;  %v3600_v32 = vld [vmem:[%s5826_s7 + $0xf8] sm:$0xff]  ;;  %v3603_v53 = vld [vmem:[%s5829_s10] ss:$0 sm:$0xff] }
 0x625   :  { %3997 = vmatmul.mubr.f32.vlgmr.msra.gmra.mrb[38].mxu1 %v2335_v37 }
 0x626   :  { %4448 = vmatpush3.bf16.msk.msra.mxu1 %vm5880_vm15, %v4643_v36  ;;  %4031 = vmatprep.mubr.msk.f32.mxu1 %vm4644_vm7, %v4640_v7 }
 0x627   :  { %4449 = vmatprep.subr.bf16.mxu1 %v4642_v31 }
 0x62a   :  { %4451 = vmatpush3.bf16.msk.msra.mxu1 %vm5881_vm13, %v4643_v36 }
 0x62b   :  { %4452 = vmatprep.subr.bf16.mxu1 %v4642_v31 }
 0x62e   :  { %4454 = vmatpush3.bf16.msk.msra.mxu1 %vm5227_vm3, %v4643_v36  ;;  %vm3308_vm3 = vcmask 74752  }
 0x62f   :  { %4455 = vmatprep.subr.bf16.mxu1 %v4642_v31 }
 0x632   :  { %4457 = vmatpush3.bf16.msk.msra.mxu1 %vm5239_vm10, %v4643_v36  ;;  %vm3231_vm10 = vcmask 687104  }
 0x633   :  { %4458 = vmatprep.subr.bf16.mxu1 %v4642_v31 }
 0x636   :  { %4460 = vmatpush3.bf16.msk.msra.mxu1 %vm5249_vm2, %v4643_v36  ;;  %vm5882_vm2 = vcmask 1043456  }
 0x637   :  { %4461 = vmatprep.subr.bf16.mxu1 %v4642_v31 }
 0x63a   :  { %4463 = vmatpush3.bf16.msk.msra.mxu1 %vm5187_vm6, %v4643_v36  ;;  %vm2644_vm6 = vcmask 523264  }
 0x63b   :  { %4464 = vmatprep.subr.bf16.mxu1 %v4642_v31 }
 0x63e   :  { %4466 = vmatpush3.bf16.msk.msra.mxu1 %vm5191_vm9, %v4643_v36  ;;  %vm2478_vm9 = vcmask 64512  }
 0x63f   :  { %4467 = vmatprep.subr.bf16.mxu1 %v4642_v31 }
 0x642   :  { %4469 = vmatpush3.bf16.msk.msra.mxu1 %vm5195_vm11, %v4643_v36  ;;  %v3573_v36 = vld [vmem:[%s5826_s7 + $0x58] sm:$0xff]  ;;  %vm3138_vm11 = vcmask 982016  }
 0x643   :  { %4470 = vmatprep.subr.bf16.mxu1 %v4642_v31  ;;  %v4474_v54 = vpack.c.bf16 %v3573_v36, %v3572_v51 }
 0x645   :  { %4032 = vmatmul.mubr.f32.vlgmr.msra.gmra.mrb[40].mxu1 %v2335_v37  ;;  %v4516_v37 = vpack.c.bf16 %v3600_v32, %v3599_v28 }
 0x646   :  { %4060 = vmatprep.mubr.msk.f32.mxu1 %vm4644_vm7, %v4640_v7  ;;  %4472 = vmatpush3.bf16.msra.mxu1 %v4471_v48  ;;  %v3117_v48 = vld [vmem:[%s5828_s9 + $0x8] sm:$0xff] }
 0x647   :  { %4473 = vmatprep.subr.bf16.mxu1 %v4642_v31  ;;  %v4519_v58 = vpack.c.bf16 %v3117_v48, %v3116_v45 }
 0x64a   :  { %4475 = vmatpush3.bf16.msra.mxu1 %v4474_v54 }
 0x64b   :  { %4476 = vmatprep.subr.bf16.mxu1 %v4642_v31 }
 0x64e   :  { %4478 = vmatpush3.bf16.msra.mxu1 %v4477_v60  ;;  %v3119_v60 = vld [vmem:[%s5828_s9 + $0x18] sm:$0xff] }
 0x64f   :  { %4479 = vmatprep.subr.bf16.mxu1 %v4642_v31 }
 0x652   :  { %4481 = vmatpush3.bf16.msra.mxu1 %v4480_v19  ;;  %v4522_v19 = vpack.c.bf16 %v3119_v60, %v3118_v59 }
 0x653   :  { %4082 = vmatprep.subr.mxu1 %v4640_v7 }
 0x6f8   :  { %v2402_v20 = vpop.f32.mrb[38].mxu1 }
 0x6f9   :  { %v3998_v22 = vpop.f32.mrb[39].mxu1 }
 0x6fa   :  { %v3121_v22 = vld [vmem:[%s5828_s9 + $0x28] sm:$0xff] }
 0x718   :  { %v2472_v57 = vpop.f32.mrb[40].mxu1 }
 0x719   :  { %v2476_v61 = vmax.f32 %v2402_v20, %v2472_v57  ;;  %v4033_v62 = vpop.f32.mrb[41].mxu1  ;;  %v3120_v20 = vld [vmem:[%s5828_s9 + $0x20] sm:$0xff] }
 0x71a   :  { %v4525_v62 = vpack.c.bf16 %v3121_v22, %v3120_v20 }
 0x71b   :  { %4035 = vmatpush3.msra.mxu0 %v2476_v61 }
 0x71c   :  { %4037 = vmatmul.mubr.msk.f32.vlgmr.msra.gmra.mrb[14].mxu0 %vm2478_vm9, %v2477_v63  ;;  %4039 = vmatprep.subr.mxu0 %v4640_v7  ;;  %v3122_v63 = vld [vmem:[%s5828_s9 + $0x30] sm:$0xff] }
 0x71d   :  { %4040 = vmatpush3.msra.mxu0 %v2476_v61  ;;  %4041 = vmatprep.mubr.msk.f32.mxu0 %vm4644_vm7, %v4640_v7  ;;  %v4528_v1 = vpack.c.bf16 %v3123_v0, %v3122_v63 }
 0x71e   :  { %4482 = vmatprep.subr.bf16.mxu0 %v4642_v31 }
 0x720   :  { %4042 = vmatmul.mubr.msk.f32.vlgmr.msra.gmra.mrb[16].mxu0 %vm2478_vm9, %v3568_v2  ;;  %v3124_v2 = vld [vmem:[%s5828_s9 + $0x40] sm:$0xff] }
 0x721   :  { %4484 = vmatpush3.bf16.msra.mxu0 %v4483_v3  ;;  %4079 = vmatprep.mubr.msk.f32.mxu0 %vm4644_vm7, %v4640_v7  ;;  %v3125_v3 = vld [vmem:[%s5828_s9 + $0x48] sm:$0xff] }
 0x722   :  { %4485 = vmatprep.subr.bf16.mxu0 %v4642_v31  ;;  %v4531_v4 = vpack.c.bf16 %v3125_v3, %v3124_v2 }
 0x725   :  { %4487 = vmatpush3.bf16.msra.mxu0 %v4486_v6  ;;  %v3127_v6 = vld [vmem:[%s5828_s9 + $0x58] sm:$0xff] }
 0x726   :  { %4488 = vmatprep.subr.bf16.mxu0 %v4642_v31  ;;  %v4534_v8 = vpack.c.bf16 %v3127_v6, %v3126_v5 }
 0x729   :  { %4490 = vmatpush3.bf16.msra.mxu0 %v4489_v13  ;;  %v3129_v13 = vld [vmem:[%s5828_s9 + $0x68] sm:$0xff] }
 0x72a   :  { %4491 = vmatprep.subr.bf16.mxu0 %v4642_v31  ;;  %v4537_v14 = vpack.c.bf16 %v3129_v13, %v3128_v11 }
 0x72d   :  { %4493 = vmatpush3.bf16.msra.mxu0 %v4492_v15  ;;  %v3213_v15 = vld [vmem:[%s5830_s11] sm:$0xff] }
 0x72e   :  { %4494 = vmatprep.subr.bf16.mxu0 %v4642_v31 }
 0x7ef   :  { %v2548_v10 = vpop.f32.mrb[14].mxu0 }
 0x7f0   :  { %v4038_v25 = vpop.f32.mrb[15].mxu0  ;;  %4080 = vmatmul.mubr.msk.f32.vlgmr.msra.gmra.mrb[18].mxu0 %vm2644_vm6, %v2548_v10  ;;  %v3216_v10 = vld [vmem:[%s5830_s11 + $0x18] sm:$0xff] }
 0x7f1   :  { %4496 = vmatpush3.bf16.msra.mxu0 %v4495_v18  ;;  %4103 = vmatprep.mubr.msk.f32.mxu0 %vm4644_vm7, %v4640_v7  ;;  %v4540_v18 = vpack.c.bf16 %v3214_v16, %v3213_v15  ;;  %v4543_v23 = vpack.c.bf16 %v3216_v10, %v3215_v17  ;;  %v3218_v25 = vld [vmem:[%s5830_s11 + $0x28] sm:$0xff] }
 0x7f2   :  { %4497 = vmatprep.subr.bf16.mxu0 %v4642_v31 }
 0x7f3   :  { %v2631_v27 = vpop.f32.mrb[16].mxu0 }
 0x7f4   :  { %4061 = vmatmul.mubr.msk.f32.vlgmr.msra.gmra.mrb[42].mxu1 %vm2644_vm6, %v2631_v27  ;;  %v4043_v34 = vpop.f32.mrb[17].mxu0  ;;  %v3219_v27 = vld [vmem:[%s5830_s11 + $0x30] sm:$0xff] }
 0x7f5   :  { %4083 = vmatpush3.msra.mxu1 %v2476_v61  ;;  %4084 = vmatprep.mubr.msk.f32.mxu1 %vm4644_vm7, %v4640_v7  ;;  %v4549_v33 = vpack.c.bf16 %v3220_v29, %v3219_v27 }
 0x7f6   :  { %4106 = vmatprep.subr.mxu1 %v4640_v7  ;;  %4499 = vmatpush3.bf16.msra.mxu0 %v4498_v26  ;;  %v4546_v26 = vpack.c.bf16 %v3218_v25, %v3217_v24 }
 0x7f7   :  { %4500 = vmatprep.subr.bf16.mxu0 %v4642_v31 }
 0x7f8   :  { %4085 = vmatmul.mubr.msk.f32.vlgmr.msra.gmra.mrb[44].mxu1 %vm2478_vm9, %v3580_v35 }
 0x7f9   :  { %4107 = vmatpush3.msra.mxu1 %v2476_v61  ;;  %4108 = vmatprep.mubr.msk.f32.mxu1 %vm4644_vm7, %v4640_v7 }
 0x7fa   :  { %4506 = vmatprep.subr.bf16.mxu1 %v4642_v31  ;;  %4502 = vmatpush3.bf16.msra.mxu0 %v4501_v40  ;;  %v3602_v40 = vld [vmem:[%s5827_s8] ss:$0 sm:$0xff] }
 0x7fb   :  { %4503 = vmatprep.subr.bf16.mxu0 %v4642_v31 }
 0x7fc   :  { %4109 = vmatmul.mubr.msk.f32.vlgmr.msra.gmra.mrb[46].mxu1 %vm2478_vm9, %v3591_v42 }
 0x7fd   :  { %4508 = vmatpush3.bf16.msra.mxu1 %v4507_v43  ;;  %4127 = vmatprep.mubr.msk.f32.mxu1 %vm4644_vm7, %v4640_v7 }
 0x7fe   :  { %4509 = vmatprep.subr.bf16.mxu1 %v4642_v31  ;;  %4505 = vmatpush3.bf16.msra.mxu0 %v4504_v55 }
 0x7ff   :  { %4518 = vmatprep.subr.bf16.mxu0 %v4642_v31 }
 0x801   :  { %4511 = vmatpush3.bf16.msra.mxu1 %v4510_v49  ;;  %v3221_v49 = vld [vmem:[%s5830_s11 + $0x40] sm:$0xff] }
 0x802   :  { %4512 = vmatprep.subr.bf16.mxu1 %v4642_v31 }
 0x805   :  { %4514 = vmatpush3.bf16.msra.mxu1 %v4513_v21 }
 0x806   :  { %4515 = vmatprep.subr.bf16.mxu1 %v4642_v31 }
 0x809   :  { %4517 = vmatpush3.bf16.msra.mxu1 %v4516_v37 }
 0x80a   :  { %4539 = vmatprep.subr.bf16.mxu1 %v4642_v31 }
 0x8c3   :  { %v2787_v41 = vpop.f32.mrb[18].mxu0 }
 0x8c4   :  { %v4081_v44 = vpop.f32.mrb[19].mxu0 }
 0x8c7   :  { %v2714_v51 = vpop.f32.mrb[42].mxu1 }
 0x8c8   :  { %v5704_v36 = vadd.f32 %v2787_v41, %v2714_v51  ;;  %v4062_v54 = vpop.f32.mrb[43].mxu1 }
 0x8cb   :  { %v2862_v9 = vpop.f32.mrb[44].mxu1 }
 0x8cc   :  { %4104 = vmatmul.mubr.msk.f32.vlgmr.msra.gmra.mrb[20].mxu0 %vm2644_vm6, %v2862_v9  ;;  %v4086_v12 = vpop.f32.mrb[45].mxu1 }
 0x8cd   :  { %4520 = vmatpush3.bf16.msra.mxu0 %v4519_v58  ;;  %4160 = vmatprep.mubr.msk.f32.mxu0 %vm4644_vm7, %v4640_v7 }
 0x8ce   :  { %4521 = vmatprep.subr.bf16.mxu0 %v4642_v31 }
 0x8cf   :  { %v3020_v57 = vpop.f32.mrb[46].mxu1 }
 0x8d0   :  { %4128 = vmatmul.mubr.msk.f32.vlgmr.msra.gmra.mrb[48].mxu1 %vm2644_vm6, %v3020_v57  ;;  %v4110_v61 = vpop.f32.mrb[47].mxu1 }
 0x8d1   :  { %4523 = vmatpush3.bf16.msra.mxu0 %v4522_v19  ;;  %4185 = vmatprep.mubr.msk.f32.mxu1 %vm4644_vm7, %v4640_v7 }
 0x8d2   :  { %4524 = vmatprep.subr.bf16.mxu0 %v4642_v31  ;;  %4541 = vmatpush3.bf16.msra.mxu1 %v4540_v18 }
 0x8d3   :  { %4542 = vmatprep.subr.bf16.mxu1 %v4642_v31 }
 0x8d5   :  { %4526 = vmatpush3.bf16.msra.mxu0 %v4525_v62 }
 0x8d6   :  { %4527 = vmatprep.subr.bf16.mxu0 %v4642_v31  ;;  %4544 = vmatpush3.bf16.msra.mxu1 %v4543_v23 }
 0x8d7   :  { %4545 = vmatprep.subr.bf16.mxu1 %v4642_v31 }
 0x8d9   :  { %4529 = vmatpush3.bf16.msra.mxu0 %v4528_v1 }
 0x8da   :  { %4530 = vmatprep.subr.bf16.mxu0 %v4642_v31  ;;  %4547 = vmatpush3.bf16.msra.mxu1 %v4546_v26 }
 0x8db   :  { %4548 = vmatprep.subr.bf16.mxu1 %v4642_v31 }
 0x8dd   :  { %4532 = vmatpush3.bf16.msra.mxu0 %v4531_v4 }
 0x8de   :  { %4533 = vmatprep.subr.bf16.mxu0 %v4642_v31  ;;  %4550 = vmatpush3.bf16.msra.mxu1 %v4549_v33 }
 0x8df   :  { %4551 = vmatprep.subr.bf16.mxu1 %v4642_v31 }
 0x8e1   :  { %4535 = vmatpush3.bf16.msra.mxu0 %v4534_v8 }
 0x8e2   :  { %4536 = vmatprep.subr.bf16.mxu0 %v4642_v31  ;;  %v3222_v31 = vld [vmem:[%s5830_s11 + $0x48] sm:$0xff]  ;;  %s4616_s11 = scalar_lea.vmem %s3317_s24, 32 }
 0x8e3   :  { %v4552_v50 = vpack.c.bf16 %v3222_v31, %v3221_v49  ;;  %p4617_p0 = scmp.ne.s32.totalorder %s3317_s24, %s4616_s11  ;;  %p4622_p2 = scmp.lt.s32.totalorder %s4616_s11, %s4616_s11 }
 0x8e5   :  { %4538 = vmatpush3.bf16.msra.mxu0 %v4537_v14  ;;  %4553 = vmatpush3.bf16.msra.mxu1 %v4552_v50  ;;  %p4623_p3 = por %p4622_p2, %p4621_p1 }
 0x8e6   :  { %4158 = vmatprep.subr.mxu0 %v4640_v7  ;;  %4183 = vmatprep.subr.mxu1 %v4640_v7  ;;  %v3605_v7 = vld [vmem:[%s5831_s12] ss:$0 sm:$0xff] }
 0x8e7   :  { %p4624_p4 = pnand %p4623_p3, %p4617_p0 }
 0x8e9   :  { %4159 = vmatpush3.msra.mxu0 %v3130_v30  ;;  %4184 = vmatpush3.msk.msra.mxu1 %vm5882_vm2, %v3223_v52 }
 0x99f   :  { %v2944_v34 = vpop.f32.mrb[20].mxu0 }
 0x9a0   :  { %v2948_v35 = vadd.f32 %v2944_v34, %v5704_v36  ;;  %v4105_v38 = vpop.f32.mrb[21].mxu0 }
 0x9a3   :  { %v3102_v39 = vpop.f32.mrb[48].mxu1 }
 0x9a4   :  { %v3106_v42 = vadd.f32 %v3102_v39, %v2948_v35  ;;  %v4129_v43 = vpop.f32.mrb[49].mxu1 }
 0x9a6   :  { %v3114_v46 = vadd.f32 %v3602_v40, %v3106_v42 }
 0x9a8   :  { %v3115_v47 = vmax.f32 %v3114_v46, 0.0 }
 0x9aa   :  { %4161 = vmatmul.mubr.msk.f32.vlgmr.msra.gmra.mrb[22].mxu0 %vm3138_vm11, %v3115_v47 }
 0xa7d   :  { %v3208_v55 = vpop.f32.mrb[22].mxu0 }
 0xa7e   :  { %v3209_v56 = vadd.f32 %v3603_v53, %v3208_v55  ;;  %v4162_v21 = vpop.f32.mrb[23].mxu0 }
 0xa80   :  { %v3212_v28 = vmax.f32 %v3209_v56, 0.0 }
 0xa82   :  { %4186 = vmatmul.mubr.msk.f32.vlgmr.msra.gmra.mrb[50].mxu1 %vm3231_vm10, %v3212_v28 }
 0xb55   :  { %v3304_v32 = vpop.f32.mrb[50].mxu1 }
 0xb56   :  { %v3305_v37 = vadd.f32 %v3605_v7, %v3304_v32  ;;  %v4187_v41 = vpop.f32.mrb[51].mxu1 }
 0xb58   :  { %3309 = vst.msk [vmem:[#allocation2] sm:$0x3] %vm3308_vm3, %v3305_v37 }
 0xb59   :  { %4627 = shalt.err (!%p4624_p4)
}
 0xb5a   :  { %s4628_s26 = scalar_lea.hbm %s5832_s13, 32 }
 0xb5b   :  { %p4629_p5 = scmp.ne.s32.totalorder %s5832_s13, %s4628_s26  ;;  %p4632_p6 = scmp.lt.u32.totalorder %s4628_s26, %s5832_s13 }
 0xb5d   :  { %p4634_p7 = pnand %p4632_p6, %p4629_p5 }
 0xb5f   :  { %4637 = shalt.err (!%p4634_p7)
}
 0xb60   :  { %3319 = dma.vmem_to_hbm [thread:$0]  %s3317_s24, 32, %s5832_s13, [#allocation3]  }
 0xb61   :  { %4638 = dma.done.wait [#allocation3], 32  }
 0xb62   :  { %4639 = vsyncadd [#allocation3], 4294967264 }
 0xb63   :  { %3323 = vsyncpa [#allocation3], 1 }

</bundles_post_ra>
